<compile_context>
chip_gen: v5e
topology: v5e:2x2
jax: 0.10.0
libtpu: 0.0.40
codegen_flags: <defaults>
</compile_context>

<pallas_src>
import functools
import math

import jax
import jax.numpy as jnp
import numpy as np
from jax import lax
from jax.experimental import pallas as pl
from jax.experimental.pallas import tpu as pltpu


# ----------------------------------------------------------------------------
# VMEM budget / chunk sizing helpers
# ----------------------------------------------------------------------------
@functools.lru_cache(maxsize=None)
def _vmem_limit_bytes():
    """~75% of physical VMEM (96 MiB v5e/v6e, 48 MiB v7x); safe fallback."""
    try:
        cap = int(pltpu.get_tpu_info().vmem_capacity_bytes)
    except Exception:
        cap = 64 * 1024 * 1024
    return (cap // 4) * 3


def _mosaic_params(dims):
    return pltpu.CompilerParams(dimension_semantics=dims,
                                vmem_limit_bytes=_vmem_limit_bytes())


def _snap_chunk_t(T, requested):
    """Largest divisor of T that is <= requested (never trips an assert)."""
    c = max(1, min(int(requested), T))
    while T % c != 0:
        c -= 1
    return c


def _pick_chunk_t(T, B, H, itemsize, target=32):
    """Generation-aware chunk_t: keep the double-buffered pipeline footprint
    (2 gx inputs + 2 outputs, 2 buffers each ~= 20*B*H*itemsize per timestep)
    well under the scoped-VMEM budget."""
    budget = _vmem_limit_bytes() // 2
    per_t = 20 * B * H * itemsize
    cap = max(1, budget // max(per_t, 1))
    return _snap_chunk_t(T, min(target, cap))


# ----------------------------------------------------------------------------
# Shared LSTM cell, gate order (i, f, o, g)  [permuted once in prepare_params]
# ----------------------------------------------------------------------------
def _lstm_cell(gates, c_prev, H):
    """gates: (B, 4H) f32 pre-activations in (i, f, o, g) order; c_prev (B, H) f32."""
    sg = jax.nn.sigmoid(gates[:, :3 * H])       # one contiguous 3H sigmoid
    g_g = jnp.tanh(gates[:, 3 * H:])            # one H-wide tanh
    i_g = sg[:, 0 * H:1 * H]
    f_g = sg[:, 1 * H:2 * H]
    o_g = sg[:, 2 * H:3 * H]
    c_new = f_g * c_prev + i_g * g_g
    h_new = o_g * jnp.tanh(c_new)
    return h_new, c_new


# ----------------------------------------------------------------------------
# Kernel 1: hoisted input projection  gx_d = sum_k x_k @ W[d,k] + b_d
#   (per-direction contiguous outputs, tiled over rows AND the 4H gate dim)
# ----------------------------------------------------------------------------
def _make_proj_kernel(n_in, n_dir):
    def kernel(*refs):
        xs = [refs[k][...] for k in range(n_in)]
        w0 = n_in
        b0 = n_in + n_in * n_dir
        o0 = b0 + n_dir
        for d in range(n_dir):
            acc = refs[b0 + d][...].astype(jnp.float32)          # (1, tn) bias
            for k in range(n_in):
                acc = acc + jnp.dot(xs[k], refs[w0 + d * n_in + k][...],
                                    preferred_element_type=jnp.float32)
            refs[o0 + d][...] = acc.astype(refs[o0 + d].dtype)
    return kernel


def _projection(inputs_3d, weights, biases, *, n_dir, out_dtype,
                tile_m=512, tile_n=512):
    """inputs_3d: list of (T, B, d_k); weights grouped by output direction.
    Returns n_dir arrays of shape (T, B, 4H) in out_dtype (bf16 in prod)."""
    T, B = inputs_3d[0].shape[:2]
    M = T * B
    G = weights[0].shape[1]
    n_in = len(inputs_3d)
    ins2 = [a.reshape(M, a.shape[2]) for a in inputs_3d]
    tm = min(tile_m, M)
    tn = min(tile_n, G)
    grid = (pl.cdiv(M, tm), pl.cdiv(G, tn))

    in_specs = [pl.BlockSpec((tm, a.shape[1]), lambda i, j: (i, 0)) for a in ins2]
    in_specs += [pl.BlockSpec((w.shape[0], tn), lambda i, j: (0, j)) for w in weights]
    in_specs += [pl.BlockSpec((1, tn), lambda i, j: (0, j)) for _ in biases]

    out_shape = tuple(jax.ShapeDtypeStruct((M, G), out_dtype) for _ in range(n_dir))
    out_specs = tuple(pl.BlockSpec((tm, tn), lambda i, j: (i, j))
                      for _ in range(n_dir))

    outs = pl.pallas_call(
        _make_proj_kernel(n_in, n_dir),
        out_shape=out_shape,
        grid=grid,
        in_specs=in_specs,
        out_specs=out_specs,
        compiler_params=_mosaic_params(("parallel", "parallel")),
    )(*ins2, *weights, *biases)
    if not isinstance(outs, (list, tuple)):
        outs = (outs,)
    return tuple(o.reshape(T, B, G) for o in outs)


# ----------------------------------------------------------------------------
# Kernel 2: fused bidirectional recurrence (intermediate layers)
# ----------------------------------------------------------------------------
def _bilstm_layer_kernel(gxf_ref, gxb_ref, whhf_ref, whhb_ref,
                         of_ref, ob_ref, h_scr, c_scr, *, unroll):
    """One time chunk of the fused fwd+bwd recurrence.

    gxf_ref : (Tc, B, 4H) precomputed x-gates, forward dir, chunk i (ascending)
    gxb_ref : (Tc, B, 4H) precomputed x-gates, backward dir, chunk nc-1-i
    whh*    : (H, 4H) hidden->gates weights (pre-transposed, bf16 in prod)
    of/ob   : (Tc, B, H) hidden-state outputs (fwd chunk i / bwd chunk nc-1-i)
    h_scr/c_scr : (2, B, H) f32 persistent [fwd, bwd] hidden / cell state
    """
    H = whhf_ref.shape[0]
    tc = gxf_ref.shape[0]
    mxu_dtype = whhf_ref.dtype

    @pl.when(pl.program_id(0) == 0)
    def _init():
        h_scr[...] = jnp.zeros_like(h_scr)
        c_scr[...] = jnp.zeros_like(c_scr)

    whh_f = whhf_ref[...]
    whh_b = whhb_ref[...]

    def step(s, carry):
        h_f, c_f, h_b, c_b = carry
        sr = tc - 1 - s
        hg_f = jnp.dot(h_f.astype(mxu_dtype), whh_f,
                       preferred_element_type=jnp.float32)
        hg_b = jnp.dot(h_b.astype(mxu_dtype), whh_b,
                       preferred_element_type=jnp.float32)
        h_f, c_f = _lstm_cell(gxf_ref[s].astype(jnp.float32) + hg_f, c_f, H)
        h_b, c_b = _lstm_cell(gxb_ref[sr].astype(jnp.float32) + hg_b, c_b, H)
        of_ref[s] = h_f.astype(of_ref.dtype)
        ob_ref[sr] = h_b.astype(ob_ref.dtype)
        return h_f, c_f, h_b, c_b

    carry0 = (h_scr[0], c_scr[0], h_scr[1], c_scr[1])
    h_f, c_f, h_b, c_b = lax.fori_loop(0, tc, step, carry0, unroll=unroll)
    h_scr[0] = h_f
    c_scr[0] = c_f
    h_scr[1] = h_b
    c_scr[1] = c_b


def bilstm_layer(gx_f, gx_b, whh_f_t, whh_b_t, *, chunk_t, unroll, out_dtype):
    T, B, G = gx_f.shape
    H = whh_f_t.shape[0]
    assert G == 4 * H and T % chunk_t == 0
    nc = T // chunk_t
    kernel = functools.partial(_bilstm_layer_kernel,
                               unroll=max(1, min(unroll, chunk_t)))
    return pl.pallas_call(
        kernel,
        out_shape=(jax.ShapeDtypeStruct((T, B, H), out_dtype),
                   jax.ShapeDtypeStruct((T, B, H), out_dtype)),
        grid=(nc,),
        in_specs=[
            pl.BlockSpec((chunk_t, B, G), lambda i: (i, 0, 0)),            # fwd asc
            pl.BlockSpec((chunk_t, B, G), lambda i, nc=nc: (nc - 1 - i, 0, 0)),  # bwd desc
            pl.BlockSpec((H, G), lambda i: (0, 0)),
            pl.BlockSpec((H, G), lambda i: (0, 0)),
        ],
        out_specs=(
            pl.BlockSpec((chunk_t, B, H), lambda i: (i, 0, 0)),
            pl.BlockSpec((chunk_t, B, H), lambda i, nc=nc: (nc - 1 - i, 0, 0)),
        ),
        scratch_shapes=[pltpu.VMEM((2, B, H), jnp.float32),
                        pltpu.VMEM((2, B, H), jnp.float32)],
        compiler_params=_mosaic_params(("arbitrary",)),   # sequential recurrence
    )(gx_f, gx_b, whh_f_t, whh_b_t)


# ----------------------------------------------------------------------------
# Kernel 3: last layer (fwd recurrence -> final h, bwd single step, fused FC)
# ----------------------------------------------------------------------------
def _bilstm_last_kernel(gxf_ref, gxb_last_ref, whhf_ref, wfcf_ref, wfcb_ref,
                        bfc_ref, out_ref, h_scr, c_scr, *, unroll):
    """Only lstm_out[:, -1, :] feeds the FC head: keep the forward direction's
    final h, do the backward direction as a single zero-state cell step (its
    gates are exactly the precomputed x-projection row), fuse the Linear head."""
    H = whhf_ref.shape[0]
    tc = gxf_ref.shape[0]
    mxu_dtype = whhf_ref.dtype

    @pl.when(pl.program_id(0) == 0)
    def _init():
        h_scr[...] = jnp.zeros_like(h_scr)
        c_scr[...] = jnp.zeros_like(c_scr)

    whh_f = whhf_ref[...]

    def step(s, carry):
        h_f, c_f = carry
        hg = jnp.dot(h_f.astype(mxu_dtype), whh_f,
                     preferred_element_type=jnp.float32)
        return _lstm_cell(gxf_ref[s].astype(jnp.float32) + hg, c_f, H)

    h_f, c_f = lax.fori_loop(0, tc, step, (h_scr[...], c_scr[...]),
                             unroll=unroll)
    h_scr[...] = h_f
    c_scr[...] = c_f

    @pl.when(pl.program_id(0) == pl.num_programs(0) - 1)
    def _finish():
        gb = gxb_last_ref[...].astype(jnp.float32)               # (B, 4H)
        zeros = jnp.zeros((gb.shape[0], H), jnp.float32)
        h_b, _ = _lstm_cell(gb, zeros, H)       # backward dir, first step only
        out_ref[...] = (
            jnp.dot(h_f, wfcf_ref[...], preferred_element_type=jnp.float32)
            + jnp.dot(h_b, wfcb_ref[...], preferred_element_type=jnp.float32)
            + bfc_ref[...]).astype(out_ref.dtype)


def bilstm_last_layer(gx_f, gxb_last, whh_f_t, fc_wf, fc_wb, fc_b,
                      *, chunk_t, unroll):
    T, B, G = gx_f.shape
    H = whh_f_t.shape[0]
    assert G == 4 * H and T % chunk_t == 0
    nc = T // chunk_t
    kernel = functools.partial(_bilstm_last_kernel,
                               unroll=max(1, min(unroll, chunk_t)))
    return pl.pallas_call(
        kernel,
        out_shape=jax.ShapeDtypeStruct((B, 1), jnp.float32),
        grid=(nc,),
        in_specs=[
            pl.BlockSpec((chunk_t, B, G), lambda i: (i, 0, 0)),
            pl.BlockSpec((B, G), lambda i: (0, 0)),
            pl.BlockSpec((H, G), lambda i: (0, 0)),
            pl.BlockSpec((H, 1), lambda i: (0, 0)),
            pl.BlockSpec((H, 1), lambda i: (0, 0)),
            pl.BlockSpec((1, 1), lambda i: (0, 0)),
        ],
        out_specs=pl.BlockSpec((B, 1), lambda i: (0, 0)),
        scratch_shapes=[pltpu.VMEM((B, H), jnp.float32),
                        pltpu.VMEM((B, H), jnp.float32)],
        compiler_params=_mosaic_params(("arbitrary",)),
    )(gx_f, gxb_last, whh_f_t, fc_wf, fc_wb, fc_b)


# ----------------------------------------------------------------------------
# Full forward (x is (B, T, input_size) batch-first like nn.LSTM(batch_first))
# ----------------------------------------------------------------------------
def bilstm_forward(x, prepped, *, chunk_t=None, unroll=8,
                   tile_m=512, tile_n=512):
    layers = prepped["layers"]
    n_layers = len(layers)
    H = layers[0]["whh_f_t"].shape[0]
    dtype = layers[0]["whh_f_t"].dtype           # MXU operand dtype (bf16/f32)

    x_tm = jnp.transpose(x, (1, 0, 2)).astype(dtype)     # time-major once
    T, B, _ = x_tm.shape
    itemsize = jnp.dtype(dtype).itemsize
    ct = (_snap_chunk_t(T, chunk_t) if chunk_t is not None
          else _pick_chunk_t(T, B, H, itemsize))

    h_f = h_b = None
    for li, lp in enumerate(layers):
        last = li == n_layers - 1
        if li == 0:
            ins3 = [x_tm]
            w_f = [lp["wih_f"]]
            w_b = [lp["wih_b"]]
        else:
            ins3 = [h_f, h_b]
            w_f = [lp["wih_f_top"], lp["wih_f_bot"]]
            w_b = [lp["wih_b_top"], lp["wih_b_bot"]]

        if last:
            # Forward-direction x-gates for all T; the backward direction is
            # only consumed at t = T-1, so compute that single row as a tiny
            # matmul instead of a full (T, B, 4H) projection + HBM roundtrip.
            (gx_f,) = _projection(ins3, w_f, [lp["b_f"]], n_dir=1,
                                  out_dtype=dtype, tile_m=tile_m, tile_n=tile_n)
            gxb_last = lp["b_b"]
            for a, w in zip(ins3, w_b):
                gxb_last = gxb_last + jnp.dot(
                    a[T - 1], w, preferred_element_type=jnp.float32)
            return bilstm_last_layer(gx_f, gxb_last.astype(jnp.float32),
                                     lp["whh_f_t"], prepped["fc_wf"],
                                     prepped["fc_wb"], prepped["fc_b"],
                                     chunk_t=ct, unroll=unroll)

        gx_f, gx_b = _projection(ins3, w_f + w_b, [lp["b_f"], lp["b_b"]],
                                 n_dir=2, out_dtype=dtype,
                                 tile_m=tile_m, tile_n=tile_n)
        h_f, h_b = bilstm_layer(gx_f, gx_b, lp["whh_f_t"], lp["whh_b_t"],
                                chunk_t=ct, unroll=unroll, out_dtype=dtype)


# ----------------------------------------------------------------------------
# Parameter init (PyTorch shapes) and one-time kernel-layout preparation
# ----------------------------------------------------------------------------
def init_params(key, input_size, hidden_size, num_layers):
    params = {"lstm": []}
    k = 1.0 / math.sqrt(hidden_size)
    for layer in range(num_layers):
        d_in = input_size if layer == 0 else 2 * hidden_size
        layer_p = {}
        for dname in ("fwd", "bwd"):
            key, k1, k2, k3, k4 = jax.random.split(key, 5)
            w_ih = jax.random.uniform(k1, (4 * hidden_size, d_in),
                                      jnp.float32, -k, k)
            w_hh = jax.random.uniform(k2, (4 * hidden_size, hidden_size),
                                      jnp.float32, -k, k)
            b_ih = jax.random.uniform(k3, (4 * hidden_size,),
                                      jnp.float32, -k, k)
            b_hh = jax.random.uniform(k4, (4 * hidden_size,),
                                      jnp.float32, -k, k)
            layer_p[dname] = (w_ih, w_hh, b_ih, b_hh)
        params["lstm"].append(layer_p)

    key, k1, k2 = jax.random.split(key, 3)
    kf = 1.0 / math.sqrt(2 * hidden_size)
    params["fc_w"] = jax.random.uniform(k1, (1, 2 * hidden_size),
                                        jnp.float32, -kf, kf)
    params["fc_b"] = jax.random.uniform(k2, (1,), jnp.float32, -kf, kf)
    return params


def _perm_ifog(a, H):
    """Reorder the gate axis from PyTorch (i, f, g, o) to kernel (i, f, o, g)."""
    return jnp.concatenate(
        [a[..., :2 * H], a[..., 3 * H:4 * H], a[..., 2 * H:3 * H]], axis=-1)


def prepare_params(raw, hidden_size, *, dtype=jnp.bfloat16):
    """Transpose / permute / cast weights once into the kernel layouts.

    `dtype` is the MXU-operand dtype (bf16 for production on v5e/v6e/v7x,
    float32 for exact parity with the fp32 PyTorch reference).  Biases and the
    FC head stay f32; gate/cell elementwise math is always f32 in-kernel."""
    H = hidden_size
    layers = []
    for li, lp in enumerate(raw["lstm"]):
        w_ih_f, w_hh_f, b_ih_f, b_hh_f = lp["fwd"]
        w_ih_b, w_hh_b, b_ih_b, b_hh_b = lp["bwd"]
        wih_f_t = _perm_ifog(jnp.asarray(w_ih_f, jnp.float32).T, H)   # (d_in, 4H)
        wih_b_t = _perm_ifog(jnp.asarray(w_ih_b, jnp.float32).T, H)
        entry = {
            "whh_f_t": _perm_ifog(jnp.asarray(w_hh_f, jnp.float32).T, H).astype(dtype),
            "whh_b_t": _perm_ifog(jnp.asarray(w_hh_b, jnp.float32).T, H).astype(dtype),
            "b_f": _perm_ifog((b_ih_f + b_hh_f).astype(jnp.float32), H).reshape(1, 4 * H),
            "b_b": _perm_ifog((b_ih_b + b_hh_b).astype(jnp.float32), H).reshape(1, 4 * H),
        }
        if li == 0:
            entry["wih_f"] = wih_f_t.astype(dtype)                    # (D, 4H)
            entry["wih_b"] = wih_b_t.astype(dtype)
        else:
            entry["wih_f_top"] = wih_f_t[:H].astype(dtype)   # x prev fwd half
            entry["wih_f_bot"] = wih_f_t[H:].astype(dtype)   # x prev bwd half
            entry["wih_b_top"] = wih_b_t[:H].astype(dtype)
            entry["wih_b_bot"] = wih_b_t[H:].astype(dtype)
        layers.append(entry)

    wfc = jnp.asarray(raw["fc_w"], jnp.float32)                        # (1, 2H)
    return {"layers": layers,
            "fc_wf": wfc[:, :H].T,                                     # (H, 1)
            "fc_wb": wfc[:, H:].T,                                     # (H, 1)
            "fc_b": jnp.asarray(raw["fc_b"], jnp.float32).reshape(1, 1)}


# ----------------------------------------------------------------------------
# Pure-JAX reference (same math as PyTorch, no Pallas) for correctness checks
# ----------------------------------------------------------------------------
def _ref_lstm_dir(x, w_ih, w_hh, b_ih, b_hh, reverse):
    B, T, _ = x.shape
    H = w_hh.shape[1]
    h = jnp.zeros((B, H), jnp.float32)
    c = jnp.zeros((B, H), jnp.float32)
    outs = [None] * T
    time_order = range(T - 1, -1, -1) if reverse else range(T)
    for t in time_order:
        gates = x[:, t, :] @ w_ih.T + h @ w_hh.T + b_ih + b_hh
        i_g = jax.nn.sigmoid(gates[:, 0 * H:1 * H])
        f_g = jax.nn.sigmoid(gates[:, 1 * H:2 * H])
        g_g = jnp.tanh(gates[:, 2 * H:3 * H])
        o_g = jax.nn.sigmoid(gates[:, 3 * H:4 * H])
        c = f_g * c + i_g * g_g
        h = o_g * jnp.tanh(c)
        outs[t] = h
    return jnp.stack(outs, axis=1)  # (B, T, H)


def bilstm_reference(x, params):
    layer_in = x
    for layer_params in params["lstm"]:
        fwd = _ref_lstm_dir(layer_in, *layer_params["fwd"], reverse=False)
        bwd = _ref_lstm_dir(layer_in, *layer_params["bwd"], reverse=True)
        layer_in = jnp.concatenate([fwd, bwd], axis=-1)
    last = layer_in[:, -1, :]
    return last @ params["fc_w"].T + params["fc_b"]


# ----------------------------------------------------------------------------
if __name__ == "__main__":
    B, T, INPUT_SIZE, HIDDEN, NUM_LAYERS = 2, 8, 4, 32, 2

    key = jax.random.PRNGKey(0)
    key, xkey = jax.random.split(key)
    x = jax.random.normal(xkey, (B, T, INPUT_SIZE), jnp.float32)

    raw_params = init_params(key, INPUT_SIZE, HIDDEN, NUM_LAYERS)
    ref = jax.block_until_ready(bilstm_reference(x, raw_params))

    # chunk_t=4 -> 2 time chunks: exercises the pipelined grid and the
    # persistent h/c scratch across grid steps.
    fwd_fn = jax.jit(functools.partial(bilstm_forward, chunk_t=4))

    # 1) float32 MXU operands: exact parity with the fp32 PyTorch reference.
    prepped_f32 = prepare_params(raw_params, HIDDEN, dtype=jnp.float32)
    out_f32 = jax.block_until_ready(fwd_fn(x, prepped_f32))
    np.testing.assert_allclose(np.asarray(out_f32), np.asarray(ref),
                               rtol=1e-4, atol=1e-4)
    assert out_f32.shape == (B, 1)

    # 2) bf16 MXU operands (production config on v5e/v6e/v7x): f32 accumulate
    #    and f32 gate/cell math, so only bf16 rounding of the operands differs.
    prepped_bf16 = prepare_params(raw_params, HIDDEN, dtype=jnp.bfloat16)
    out_bf16 = jax.block_until_ready(fwd_fn(x, prepped_bf16))
    assert out_bf16.shape == (B, 1)
    np.testing.assert_allclose(np.asarray(out_bf16), np.asarray(ref),
                               rtol=1e-1, atol=1e-1)

    print("KERNEL_OK")
</pallas_src>

<mosaic_0001>
module attributes {stable_mosaic.version = 11 : i64} {
  func.func @_bilstm_layer_kernel(%arg0: i32, %arg1: memref<4x2x128xf32, #tpu.memory_space<vmem>>, %arg2: memref<4x2x128xf32, #tpu.memory_space<vmem>>, %arg3: memref<32x128xf32, #tpu.memory_space<vmem>>, %arg4: memref<32x128xf32, #tpu.memory_space<vmem>>, %arg5: memref<4x2x32xf32, #tpu.memory_space<vmem>>, %arg6: memref<4x2x32xf32, #tpu.memory_space<vmem>>, %arg7: memref<2x2x32xf32, #tpu.memory_space<vmem>>, %arg8: memref<2x2x32xf32, #tpu.memory_space<vmem>>) attributes {dimension_semantics = [#tpu.dimension_semantics<arbitrary>], iteration_bounds = array<i64: 2>, scalar_prefetch = 0 : i64, scratch_operands = 2 : i64, tpu.core_type = #tpu.core_type<tc>, window_params = [{transform_indices = @transform_0, window_bounds = array<i64: 4, 2, 128>}, {transform_indices = @transform_1, window_bounds = array<i64: 4, 2, 128>}, {pipeline_mode = #tpu.pipeline_mode<synchronous>, transform_indices = @transform_2, window_bounds = array<i64: 32, 128>}, {pipeline_mode = #tpu.pipeline_mode<synchronous>, transform_indices = @transform_3, window_bounds = array<i64: 32, 128>}, {transform_indices = @transform_4, window_bounds = array<i64: 4, 2, 32>}, {transform_indices = @transform_5, window_bounds = array<i64: 4, 2, 32>}]} {
    %c0_i32 = arith.constant 0 : i32
    %0 = arith.cmpi eq, %arg0, %c0_i32 : i32
    %1 = arith.extui %0 : i1 to i32
    %c0_i32_0 = arith.constant 0 : i32
    %2 = arith.cmpi ne, %1, %c0_i32_0 : i32
    scf.if %2 {
      %cst_79 = arith.constant 0.000000e+00 : f32
      %229 = vector.broadcast %cst_79 : f32 to vector<2x2x32xf32>
      %c0_80 = arith.constant 0 : index
      %c0_81 = arith.constant 0 : index
      %c0_82 = arith.constant 0 : index
      %230 = vector.load %arg7[%c0_80, %c0_81, %c0_82] : memref<2x2x32xf32, #tpu.memory_space<vmem>>, vector<2x2x32xf32>
      tpu.vector_store %arg7[%c0_80, %c0_81, %c0_82], %229 {strides = array<i32>} : memref<2x2x32xf32, #tpu.memory_space<vmem>>, vector<2x2x32xf32>,
      %cst_83 = arith.constant 0.000000e+00 : f32
      %231 = vector.broadcast %cst_83 : f32 to vector<2x2x32xf32>
      %c0_84 = arith.constant 0 : index
      %c0_85 = arith.constant 0 : index
      %c0_86 = arith.constant 0 : index
      %232 = vector.load %arg8[%c0_84, %c0_85, %c0_86] : memref<2x2x32xf32, #tpu.memory_space<vmem>>, vector<2x2x32xf32>
      tpu.vector_store %arg8[%c0_84, %c0_85, %c0_86], %231 {strides = array<i32>} : memref<2x2x32xf32, #tpu.memory_space<vmem>>, vector<2x2x32xf32>,
    } else {
    }
    %c0 = arith.constant 0 : index
    %c0_1 = arith.constant 0 : index
    %3 = vector.load %arg3[%c0, %c0_1] : memref<32x128xf32, #tpu.memory_space<vmem>>, vector<32x128xf32>
    %c0_2 = arith.constant 0 : index
    %c0_3 = arith.constant 0 : index
    %4 = vector.load %arg4[%c0_2, %c0_3] : memref<32x128xf32, #tpu.memory_space<vmem>>, vector<32x128xf32>
    %c0_4 = arith.constant 0 : index
    %c0_5 = arith.constant 0 : index
    %c0_6 = arith.constant 0 : index
    %5 = vector.load %arg7[%c0_4, %c0_5, %c0_6] : memref<2x2x32xf32, #tpu.memory_space<vmem>>, vector<1x2x32xf32>
    %6 = vector.shape_cast %5 : vector<1x2x32xf32> to vector<2x32xf32>
    %c0_7 = arith.constant 0 : index
    %c0_8 = arith.constant 0 : index
    %c0_9 = arith.constant 0 : index
    %7 = vector.load %arg8[%c0_7, %c0_8, %c0_9] : memref<2x2x32xf32, #tpu.memory_space<vmem>>, vector<1x2x32xf32>
    %8 = vector.shape_cast %7 : vector<1x2x32xf32> to vector<2x32xf32>
    %c1 = arith.constant 1 : index
    %c0_10 = arith.constant 0 : index
    %c0_11 = arith.constant 0 : index
    %9 = vector.load %arg7[%c1, %c0_10, %c0_11] : memref<2x2x32xf32, #tpu.memory_space<vmem>>, vector<1x2x32xf32>
    %10 = vector.shape_cast %9 : vector<1x2x32xf32> to vector<2x32xf32>
    %c1_12 = arith.constant 1 : index
    %c0_13 = arith.constant 0 : index
    %c0_14 = arith.constant 0 : index
    %11 = vector.load %arg8[%c1_12, %c0_13, %c0_14] : memref<2x2x32xf32, #tpu.memory_space<vmem>>, vector<1x2x32xf32>
    %12 = vector.shape_cast %11 : vector<1x2x32xf32> to vector<2x32xf32>
    %c0_i32_15 = arith.constant 0 : i32
    %c3_i32 = arith.constant 3 : i32
    %13 = arith.subi %c3_i32, %c0_i32_15 : i32
    %cst = arith.constant dense<0.000000e+00> : vector<2x128xf32>
    %14 = tpu.matmul %6, %3, %cst {dimension_numbers = #tpu.dot_dimension_numbers<[1], [0], [0], [1], [0, 0, 1, 1], [], []>} : vector<2x32xf32>, vector<32x128xf32>, vector<2x128xf32> -> vector<2x128xf32>
    %cst_16 = arith.constant dense<0.000000e+00> : vector<2x128xf32>
    %15 = tpu.matmul %10, %4, %cst_16 {dimension_numbers = #tpu.dot_dimension_numbers<[1], [0], [0], [1], [0, 0, 1, 1], [], []>} : vector<2x32xf32>, vector<32x128xf32>, vector<2x128xf32> -> vector<2x128xf32>
    %16 = arith.index_cast %c0_i32_15 : i32 to index
    %c0_17 = arith.constant 0 : index
    %c0_18 = arith.constant 0 : index
    %17 = vector.load %arg1[%16, %c0_17, %c0_18] : memref<4x2x128xf32, #tpu.memory_space<vmem>>, vector<1x2x128xf32>
    %18 = vector.shape_cast %17 : vector<1x2x128xf32> to vector<2x128xf32>
    %19 = arith.addf %18, %14 : vector<2x128xf32>
    %20 = vector.extract_strided_slice %19 {offsets = [0, 0], sizes = [2, 96], strides = [1, 1]} : vector<2x128xf32> to vector<2x96xf32>
    %21 = arith.negf %20 : vector<2x96xf32>
    %22 = math.exp %21 : vector<2x96xf32>
    %cst_19 = arith.constant 1.000000e+00 : f32
    %23 = vector.broadcast %cst_19 : f32 to vector<2x96xf32>
    %24 = arith.addf %23, %22 : vector<2x96xf32>
    %25 = arith.divf %23, %24 : vector<2x96xf32>
    %26 = vector.extract_strided_slice %19 {offsets = [0, 96], sizes = [2, 32], strides = [1, 1]} : vector<2x128xf32> to vector<2x32xf32>
    %27 = math.tanh %26 : vector<2x32xf32>
    %28 = vector.extract_strided_slice %25 {offsets = [0, 0], sizes = [2, 32], strides = [1, 1]} : vector<2x96xf32> to vector<2x32xf32>
    %29 = vector.extract_strided_slice %25 {offsets = [0, 32], sizes = [2, 32], strides = [1, 1]} : vector<2x96xf32> to vector<2x32xf32>
    %30 = vector.extract_strided_slice %25 {offsets = [0, 64], sizes = [2, 32], strides = [1, 1]} : vector<2x96xf32> to vector<2x32xf32>
    %31 = arith.mulf %29, %8 : vector<2x32xf32>
    %32 = arith.mulf %28, %27 : vector<2x32xf32>
    %33 = arith.addf %31, %32 : vector<2x32xf32>
    %34 = math.tanh %33 : vector<2x32xf32>
    %35 = arith.mulf %30, %34 : vector<2x32xf32>
    %36 = arith.index_cast %13 : i32 to index
    %c0_20 = arith.constant 0 : index
    %c0_21 = arith.constant 0 : index
    %37 = vector.load %arg2[%36, %c0_20, %c0_21] : memref<4x2x128xf32, #tpu.memory_space<vmem>>, vector<1x2x128xf32>
    %38 = vector.shape_cast %37 : vector<1x2x128xf32> to vector<2x128xf32>
    %39 = arith.addf %38, %15 : vector<2x128xf32>
    %40 = vector.extract_strided_slice %39 {offsets = [0, 0], sizes = [2, 96], strides = [1, 1]} : vector<2x128xf32> to vector<2x96xf32>
    %41 = arith.negf %40 : vector<2x96xf32>
    %42 = math.exp %41 : vector<2x96xf32>
    %cst_22 = arith.constant 1.000000e+00 : f32
    %43 = vector.broadcast %cst_22 : f32 to vector<2x96xf32>
    %44 = arith.addf %43, %42 : vector<2x96xf32>
    %45 = arith.divf %43, %44 : vector<2x96xf32>
    %46 = vector.extract_strided_slice %39 {offsets = [0, 96], sizes = [2, 32], strides = [1, 1]} : vector<2x128xf32> to vector<2x32xf32>
    %47 = math.tanh %46 : vector<2x32xf32>
    %48 = vector.extract_strided_slice %45 {offsets = [0, 0], sizes = [2, 32], strides = [1, 1]} : vector<2x96xf32> to vector<2x32xf32>
    %49 = vector.extract_strided_slice %45 {offsets = [0, 32], sizes = [2, 32], strides = [1, 1]} : vector<2x96xf32> to vector<2x32xf32>
    %50 = vector.extract_strided_slice %45 {offsets = [0, 64], sizes = [2, 32], strides = [1, 1]} : vector<2x96xf32> to vector<2x32xf32>
    %51 = arith.mulf %49, %12 : vector<2x32xf32>
    %52 = arith.mulf %48, %47 : vector<2x32xf32>
    %53 = arith.addf %51, %52 : vector<2x32xf32>
    %54 = math.tanh %53 : vector<2x32xf32>
    %55 = arith.mulf %50, %54 : vector<2x32xf32>
    %56 = arith.index_cast %c0_i32_15 : i32 to index
    %c0_23 = arith.constant 0 : index
    %c0_24 = arith.constant 0 : index
    %57 = vector.load %arg5[%56, %c0_23, %c0_24] : memref<4x2x32xf32, #tpu.memory_space<vmem>>, vector<1x2x32xf32>
    %58 = vector.shape_cast %57 : vector<1x2x32xf32> to vector<2x32xf32>
    %59 = vector.shape_cast %35 : vector<2x32xf32> to vector<1x2x32xf32>
    tpu.vector_store %arg5[%56, %c0_23, %c0_24], %59 {strides = array<i32>} : memref<4x2x32xf32, #tpu.memory_space<vmem>>, vector<1x2x32xf32>,
    %60 = arith.index_cast %13 : i32 to index
    %c0_25 = arith.constant 0 : index
    %c0_26 = arith.constant 0 : index
    %61 = vector.load %arg6[%60, %c0_25, %c0_26] : memref<4x2x32xf32, #tpu.memory_space<vmem>>, vector<1x2x32xf32>
    %62 = vector.shape_cast %61 : vector<1x2x32xf32> to vector<2x32xf32>
    %63 = vector.shape_cast %55 : vector<2x32xf32> to vector<1x2x32xf32>
    tpu.vector_store %arg6[%60, %c0_25, %c0_26], %63 {strides = array<i32>} : memref<4x2x32xf32, #tpu.memory_space<vmem>>, vector<1x2x32xf32>,
    %c1_i32 = arith.constant 1 : i32
    %c3_i32_27 = arith.constant 3 : i32
    %64 = arith.subi %c3_i32_27, %c1_i32 : i32
    %cst_28 = arith.constant dense<0.000000e+00> : vector<2x128xf32>
    %65 = tpu.matmul %35, %3, %cst_28 {dimension_numbers = #tpu.dot_dimension_numbers<[1], [0], [0], [1], [0, 0, 1, 1], [], []>} : vector<2x32xf32>, vector<32x128xf32>, vector<2x128xf32> -> vector<2x128xf32>
    %cst_29 = arith.constant dense<0.000000e+00> : vector<2x128xf32>
    %66 = tpu.matmul %55, %4, %cst_29 {dimension_numbers = #tpu.dot_dimension_numbers<[1], [0], [0], [1], [0, 0, 1, 1], [], []>} : vector<2x32xf32>, vector<32x128xf32>, vector<2x128xf32> -> vector<2x128xf32>
    %67 = arith.index_cast %c1_i32 : i32 to index
    %c0_30 = arith.constant 0 : index
    %c0_31 = arith.constant 0 : index
    %68 = vector.load %arg1[%67, %c0_30, %c0_31] : memref<4x2x128xf32, #tpu.memory_space<vmem>>, vector<1x2x128xf32>
    %69 = vector.shape_cast %68 : vector<1x2x128xf32> to vector<2x128xf32>
    %70 = arith.addf %69, %65 : vector<2x128xf32>
    %71 = vector.extract_strided_slice %70 {offsets = [0, 0], sizes = [2, 96], strides = [1, 1]} : vector<2x128xf32> to vector<2x96xf32>
    %72 = arith.negf %71 : vector<2x96xf32>
    %73 = math.exp %72 : vector<2x96xf32>
    %cst_32 = arith.constant 1.000000e+00 : f32
    %74 = vector.broadcast %cst_32 : f32 to vector<2x96xf32>
    %75 = arith.addf %74, %73 : vector<2x96xf32>
    %76 = arith.divf %74, %75 : vector<2x96xf32>
    %77 = vector.extract_strided_slice %70 {offsets = [0, 96], sizes = [2, 32], strides = [1, 1]} : vector<2x128xf32> to vector<2x32xf32>
    %78 = math.tanh %77 : vector<2x32xf32>
    %79 = vector.extract_strided_slice %76 {offsets = [0, 0], sizes = [2, 32], strides = [1, 1]} : vector<2x96xf32> to vector<2x32xf32>
    %80 = vector.extract_strided_slice %76 {offsets = [0, 32], sizes = [2, 32], strides = [1, 1]} : vector<2x96xf32> to vector<2x32xf32>
    %81 = vector.extract_strided_slice %76 {offsets = [0, 64], sizes = [2, 32], strides = [1, 1]} : vector<2x96xf32> to vector<2x32xf32>
    %82 = arith.mulf %80, %33 : vector<2x32xf32>
    %83 = arith.mulf %79, %78 : vector<2x32xf32>
    %84 = arith.addf %82, %83 : vector<2x32xf32>
    %85 = math.tanh %84 : vector<2x32xf32>
    %86 = arith.mulf %81, %85 : vector<2x32xf32>
    %87 = arith.index_cast %64 : i32 to index
    %c0_33 = arith.constant 0 : index
    %c0_34 = arith.constant 0 : index
    %88 = vector.load %arg2[%87, %c0_33, %c0_34] : memref<4x2x128xf32, #tpu.memory_space<vmem>>, vector<1x2x128xf32>
    %89 = vector.shape_cast %88 : vector<1x2x128xf32> to vector<2x128xf32>
    %90 = arith.addf %89, %66 : vector<2x128xf32>
    %91 = vector.extract_strided_slice %90 {offsets = [0, 0], sizes = [2, 96], strides = [1, 1]} : vector<2x128xf32> to vector<2x96xf32>
    %92 = arith.negf %91 : vector<2x96xf32>
    %93 = math.exp %92 : vector<2x96xf32>
    %cst_35 = arith.constant 1.000000e+00 : f32
    %94 = vector.broadcast %cst_35 : f32 to vector<2x96xf32>
    %95 = arith.addf %94, %93 : vector<2x96xf32>
    %96 = arith.divf %94, %95 : vector<2x96xf32>
    %97 = vector.extract_strided_slice %90 {offsets = [0, 96], sizes = [2, 32], strides = [1, 1]} : vector<2x128xf32> to vector<2x32xf32>
    %98 = math.tanh %97 : vector<2x32xf32>
    %99 = vector.extract_strided_slice %96 {offsets = [0, 0], sizes = [2, 32], strides = [1, 1]} : vector<2x96xf32> to vector<2x32xf32>
    %100 = vector.extract_strided_slice %96 {offsets = [0, 32], sizes = [2, 32], strides = [1, 1]} : vector<2x96xf32> to vector<2x32xf32>
    %101 = vector.extract_strided_slice %96 {offsets = [0, 64], sizes = [2, 32], strides = [1, 1]} : vector<2x96xf32> to vector<2x32xf32>
    %102 = arith.mulf %100, %53 : vector<2x32xf32>
    %103 = arith.mulf %99, %98 : vector<2x32xf32>
    %104 = arith.addf %102, %103 : vector<2x32xf32>
    %105 = math.tanh %104 : vector<2x32xf32>
    %106 = arith.mulf %101, %105 : vector<2x32xf32>
    %107 = arith.index_cast %c1_i32 : i32 to index
    %c0_36 = arith.constant 0 : index
    %c0_37 = arith.constant 0 : index
    %108 = vector.load %arg5[%107, %c0_36, %c0_37] : memref<4x2x32xf32, #tpu.memory_space<vmem>>, vector<1x2x32xf32>
    %109 = vector.shape_cast %108 : vector<1x2x32xf32> to vector<2x32xf32>
    %110 = vector.shape_cast %86 : vector<2x32xf32> to vector<1x2x32xf32>
    tpu.vector_store %arg5[%107, %c0_36, %c0_37], %110 {strides = array<i32>} : memref<4x2x32xf32, #tpu.memory_space<vmem>>, vector<1x2x32xf32>,
    %111 = arith.index_cast %64 : i32 to index
    %c0_38 = arith.constant 0 : index
    %c0_39 = arith.constant 0 : index
    %112 = vector.load %arg6[%111, %c0_38, %c0_39] : memref<4x2x32xf32, #tpu.memory_space<vmem>>, vector<1x2x32xf32>
    %113 = vector.shape_cast %112 : vector<1x2x32xf32> to vector<2x32xf32>
    %114 = vector.shape_cast %106 : vector<2x32xf32> to vector<1x2x32xf32>
    tpu.vector_store %arg6[%111, %c0_38, %c0_39], %114 {strides = array<i32>} : memref<4x2x32xf32, #tpu.memory_space<vmem>>, vector<1x2x32xf32>,
    %c2_i32 = arith.constant 2 : i32
    %c3_i32_40 = arith.constant 3 : i32
    %115 = arith.subi %c3_i32_40, %c2_i32 : i32
    %cst_41 = arith.constant dense<0.000000e+00> : vector<2x128xf32>
    %116 = tpu.matmul %86, %3, %cst_41 {dimension_numbers = #tpu.dot_dimension_numbers<[1], [0], [0], [1], [0, 0, 1, 1], [], []>} : vector<2x32xf32>, vector<32x128xf32>, vector<2x128xf32> -> vector<2x128xf32>
    %cst_42 = arith.constant dense<0.000000e+00> : vector<2x128xf32>
    %117 = tpu.matmul %106, %4, %cst_42 {dimension_numbers = #tpu.dot_dimension_numbers<[1], [0], [0], [1], [0, 0, 1, 1], [], []>} : vector<2x32xf32>, vector<32x128xf32>, vector<2x128xf32> -> vector<2x128xf32>
    %118 = arith.index_cast %c2_i32 : i32 to index
    %c0_43 = arith.constant 0 : index
    %c0_44 = arith.constant 0 : index
    %119 = vector.load %arg1[%118, %c0_43, %c0_44] : memref<4x2x128xf32, #tpu.memory_space<vmem>>, vector<1x2x128xf32>
    %120 = vector.shape_cast %119 : vector<1x2x128xf32> to vector<2x128xf32>
    %121 = arith.addf %120, %116 : vector<2x128xf32>
    %122 = vector.extract_strided_slice %121 {offsets = [0, 0], sizes = [2, 96], strides = [1, 1]} : vector<2x128xf32> to vector<2x96xf32>
    %123 = arith.negf %122 : vector<2x96xf32>
    %124 = math.exp %123 : vector<2x96xf32>
    %cst_45 = arith.constant 1.000000e+00 : f32
    %125 = vector.broadcast %cst_45 : f32 to vector<2x96xf32>
    %126 = arith.addf %125, %124 : vector<2x96xf32>
    %127 = arith.divf %125, %126 : vector<2x96xf32>
    %128 = vector.extract_strided_slice %121 {offsets = [0, 96], sizes = [2, 32], strides = [1, 1]} : vector<2x128xf32> to vector<2x32xf32>
    %129 = math.tanh %128 : vector<2x32xf32>
    %130 = vector.extract_strided_slice %127 {offsets = [0, 0], sizes = [2, 32], strides = [1, 1]} : vector<2x96xf32> to vector<2x32xf32>
    %131 = vector.extract_strided_slice %127 {offsets = [0, 32], sizes = [2, 32], strides = [1, 1]} : vector<2x96xf32> to vector<2x32xf32>
    %132 = vector.extract_strided_slice %127 {offsets = [0, 64], sizes = [2, 32], strides = [1, 1]} : vector<2x96xf32> to vector<2x32xf32>
    %133 = arith.mulf %131, %84 : vector<2x32xf32>
    %134 = arith.mulf %130, %129 : vector<2x32xf32>
    %135 = arith.addf %133, %134 : vector<2x32xf32>
    %136 = math.tanh %135 : vector<2x32xf32>
    %137 = arith.mulf %132, %136 : vector<2x32xf32>
    %138 = arith.index_cast %115 : i32 to index
    %c0_46 = arith.constant 0 : index
    %c0_47 = arith.constant 0 : index
    %139 = vector.load %arg2[%138, %c0_46, %c0_47] : memref<4x2x128xf32, #tpu.memory_space<vmem>>, vector<1x2x128xf32>
    %140 = vector.shape_cast %139 : vector<1x2x128xf32> to vector<2x128xf32>
    %141 = arith.addf %140, %117 : vector<2x128xf32>
    %142 = vector.extract_strided_slice %141 {offsets = [0, 0], sizes = [2, 96], strides = [1, 1]} : vector<2x128xf32> to vector<2x96xf32>
    %143 = arith.negf %142 : vector<2x96xf32>
    %144 = math.exp %143 : vector<2x96xf32>
    %cst_48 = arith.constant 1.000000e+00 : f32
    %145 = vector.broadcast %cst_48 : f32 to vector<2x96xf32>
    %146 = arith.addf %145, %144 : vector<2x96xf32>
    %147 = arith.divf %145, %146 : vector<2x96xf32>
    %148 = vector.extract_strided_slice %141 {offsets = [0, 96], sizes = [2, 32], strides = [1, 1]} : vector<2x128xf32> to vector<2x32xf32>
    %149 = math.tanh %148 : vector<2x32xf32>
    %150 = vector.extract_strided_slice %147 {offsets = [0, 0], sizes = [2, 32], strides = [1, 1]} : vector<2x96xf32> to vector<2x32xf32>
    %151 = vector.extract_strided_slice %147 {offsets = [0, 32], sizes = [2, 32], strides = [1, 1]} : vector<2x96xf32> to vector<2x32xf32>
    %152 = vector.extract_strided_slice %147 {offsets = [0, 64], sizes = [2, 32], strides = [1, 1]} : vector<2x96xf32> to vector<2x32xf32>
    %153 = arith.mulf %151, %104 : vector<2x32xf32>
    %154 = arith.mulf %150, %149 : vector<2x32xf32>
    %155 = arith.addf %153, %154 : vector<2x32xf32>
    %156 = math.tanh %155 : vector<2x32xf32>
    %157 = arith.mulf %152, %156 : vector<2x32xf32>
    %158 = arith.index_cast %c2_i32 : i32 to index
    %c0_49 = arith.constant 0 : index
    %c0_50 = arith.constant 0 : index
    %159 = vector.load %arg5[%158, %c0_49, %c0_50] : memref<4x2x32xf32, #tpu.memory_space<vmem>>, vector<1x2x32xf32>
    %160 = vector.shape_cast %159 : vector<1x2x32xf32> to vector<2x32xf32>
    %161 = vector.shape_cast %137 : vector<2x32xf32> to vector<1x2x32xf32>
    tpu.vector_store %arg5[%158, %c0_49, %c0_50], %161 {strides = array<i32>} : memref<4x2x32xf32, #tpu.memory_space<vmem>>, vector<1x2x32xf32>,
    %162 = arith.index_cast %115 : i32 to index
    %c0_51 = arith.constant 0 : index
    %c0_52 = arith.constant 0 : index
    %163 = vector.load %arg6[%162, %c0_51, %c0_52] : memref<4x2x32xf32, #tpu.memory_space<vmem>>, vector<1x2x32xf32>
    %164 = vector.shape_cast %163 : vector<1x2x32xf32> to vector<2x32xf32>
    %165 = vector.shape_cast %157 : vector<2x32xf32> to vector<1x2x32xf32>
    tpu.vector_store %arg6[%162, %c0_51, %c0_52], %165 {strides = array<i32>} : memref<4x2x32xf32, #tpu.memory_space<vmem>>, vector<1x2x32xf32>,
    %c3_i32_53 = arith.constant 3 : i32
    %c3_i32_54 = arith.constant 3 : i32
    %166 = arith.subi %c3_i32_54, %c3_i32_53 : i32
    %cst_55 = arith.constant dense<0.000000e+00> : vector<2x128xf32>
    %167 = tpu.matmul %137, %3, %cst_55 {dimension_numbers = #tpu.dot_dimension_numbers<[1], [0], [0], [1], [0, 0, 1, 1], [], []>} : vector<2x32xf32>, vector<32x128xf32>, vector<2x128xf32> -> vector<2x128xf32>
    %cst_56 = arith.constant dense<0.000000e+00> : vector<2x128xf32>
    %168 = tpu.matmul %157, %4, %cst_56 {dimension_numbers = #tpu.dot_dimension_numbers<[1], [0], [0], [1], [0, 0, 1, 1], [], []>} : vector<2x32xf32>, vector<32x128xf32>, vector<2x128xf32> -> vector<2x128xf32>
    %169 = arith.index_cast %c3_i32_53 : i32 to index
    %c0_57 = arith.constant 0 : index
    %c0_58 = arith.constant 0 : index
    %170 = vector.load %arg1[%169, %c0_57, %c0_58] : memref<4x2x128xf32, #tpu.memory_space<vmem>>, vector<1x2x128xf32>
    %171 = vector.shape_cast %170 : vector<1x2x128xf32> to vector<2x128xf32>
    %172 = arith.addf %171, %167 : vector<2x128xf32>
    %173 = vector.extract_strided_slice %172 {offsets = [0, 0], sizes = [2, 96], strides = [1, 1]} : vector<2x128xf32> to vector<2x96xf32>
    %174 = arith.negf %173 : vector<2x96xf32>
    %175 = math.exp %174 : vector<2x96xf32>
    %cst_59 = arith.constant 1.000000e+00 : f32
    %176 = vector.broadcast %cst_59 : f32 to vector<2x96xf32>
    %177 = arith.addf %176, %175 : vector<2x96xf32>
    %178 = arith.divf %176, %177 : vector<2x96xf32>
    %179 = vector.extract_strided_slice %172 {offsets = [0, 96], sizes = [2, 32], strides = [1, 1]} : vector<2x128xf32> to vector<2x32xf32>
    %180 = math.tanh %179 : vector<2x32xf32>
    %181 = vector.extract_strided_slice %178 {offsets = [0, 0], sizes = [2, 32], strides = [1, 1]} : vector<2x96xf32> to vector<2x32xf32>
    %182 = vector.extract_strided_slice %178 {offsets = [0, 32], sizes = [2, 32], strides = [1, 1]} : vector<2x96xf32> to vector<2x32xf32>
    %183 = vector.extract_strided_slice %178 {offsets = [0, 64], sizes = [2, 32], strides = [1, 1]} : vector<2x96xf32> to vector<2x32xf32>
    %184 = arith.mulf %182, %135 : vector<2x32xf32>
    %185 = arith.mulf %181, %180 : vector<2x32xf32>
    %186 = arith.addf %184, %185 : vector<2x32xf32>
    %187 = math.tanh %186 : vector<2x32xf32>
    %188 = arith.mulf %183, %187 : vector<2x32xf32>
    %189 = arith.index_cast %166 : i32 to index
    %c0_60 = arith.constant 0 : index
    %c0_61 = arith.constant 0 : index
    %190 = vector.load %arg2[%189, %c0_60, %c0_61] : memref<4x2x128xf32, #tpu.memory_space<vmem>>, vector<1x2x128xf32>
    %191 = vector.shape_cast %190 : vector<1x2x128xf32> to vector<2x128xf32>
    %192 = arith.addf %191, %168 : vector<2x128xf32>
    %193 = vector.extract_strided_slice %192 {offsets = [0, 0], sizes = [2, 96], strides = [1, 1]} : vector<2x128xf32> to vector<2x96xf32>
    %194 = arith.negf %193 : vector<2x96xf32>
    %195 = math.exp %194 : vector<2x96xf32>
    %cst_62 = arith.constant 1.000000e+00 : f32
    %196 = vector.broadcast %cst_62 : f32 to vector<2x96xf32>
    %197 = arith.addf %196, %195 : vector<2x96xf32>
    %198 = arith.divf %196, %197 : vector<2x96xf32>
    %199 = vector.extract_strided_slice %192 {offsets = [0, 96], sizes = [2, 32], strides = [1, 1]} : vector<2x128xf32> to vector<2x32xf32>
    %200 = math.tanh %199 : vector<2x32xf32>
    %201 = vector.extract_strided_slice %198 {offsets = [0, 0], sizes = [2, 32], strides = [1, 1]} : vector<2x96xf32> to vector<2x32xf32>
    %202 = vector.extract_strided_slice %198 {offsets = [0, 32], sizes = [2, 32], strides = [1, 1]} : vector<2x96xf32> to vector<2x32xf32>
    %203 = vector.extract_strided_slice %198 {offsets = [0, 64], sizes = [2, 32], strides = [1, 1]} : vector<2x96xf32> to vector<2x32xf32>
    %204 = arith.mulf %202, %155 : vector<2x32xf32>
    %205 = arith.mulf %201, %200 : vector<2x32xf32>
    %206 = arith.addf %204, %205 : vector<2x32xf32>
    %207 = math.tanh %206 : vector<2x32xf32>
    %208 = arith.mulf %203, %207 : vector<2x32xf32>
    %209 = arith.index_cast %c3_i32_53 : i32 to index
    %c0_63 = arith.constant 0 : index
    %c0_64 = arith.constant 0 : index
    %210 = vector.load %arg5[%209, %c0_63, %c0_64] : memref<4x2x32xf32, #tpu.memory_space<vmem>>, vector<1x2x32xf32>
    %211 = vector.shape_cast %210 : vector<1x2x32xf32> to vector<2x32xf32>
    %212 = vector.shape_cast %188 : vector<2x32xf32> to vector<1x2x32xf32>
    tpu.vector_store %arg5[%209, %c0_63, %c0_64], %212 {strides = array<i32>} : memref<4x2x32xf32, #tpu.memory_space<vmem>>, vector<1x2x32xf32>,
    %213 = arith.index_cast %166 : i32 to index
    %c0_65 = arith.constant 0 : index
    %c0_66 = arith.constant 0 : index
    %214 = vector.load %arg6[%213, %c0_65, %c0_66] : memref<4x2x32xf32, #tpu.memory_space<vmem>>, vector<1x2x32xf32>
    %215 = vector.shape_cast %214 : vector<1x2x32xf32> to vector<2x32xf32>
    %216 = vector.shape_cast %208 : vector<2x32xf32> to vector<1x2x32xf32>
    tpu.vector_store %arg6[%213, %c0_65, %c0_66], %216 {strides = array<i32>} : memref<4x2x32xf32, #tpu.memory_space<vmem>>, vector<1x2x32xf32>,
    %c4_i32 = arith.constant 4 : i32
    %c0_67 = arith.constant 0 : index
    %c0_68 = arith.constant 0 : index
    %c0_69 = arith.constant 0 : index
    %217 = vector.load %arg7[%c0_67, %c0_68, %c0_69] : memref<2x2x32xf32, #tpu.memory_space<vmem>>, vector<1x2x32xf32>
    %218 = vector.shape_cast %217 : vector<1x2x32xf32> to vector<2x32xf32>
    %219 = vector.shape_cast %188 : vector<2x32xf32> to vector<1x2x32xf32>
    tpu.vector_store %arg7[%c0_67, %c0_68, %c0_69], %219 {strides = array<i32>} : memref<2x2x32xf32, #tpu.memory_space<vmem>>, vector<1x2x32xf32>,
    %c0_70 = arith.constant 0 : index
    %c0_71 = arith.constant 0 : index
    %c0_72 = arith.constant 0 : index
    %220 = vector.load %arg8[%c0_70, %c0_71, %c0_72] : memref<2x2x32xf32, #tpu.memory_space<vmem>>, vector<1x2x32xf32>
    %221 = vector.shape_cast %220 : vector<1x2x32xf32> to vector<2x32xf32>
    %222 = vector.shape_cast %186 : vector<2x32xf32> to vector<1x2x32xf32>
    tpu.vector_store %arg8[%c0_70, %c0_71, %c0_72], %222 {strides = array<i32>} : memref<2x2x32xf32, #tpu.memory_space<vmem>>, vector<1x2x32xf32>,
    %c1_73 = arith.constant 1 : index
    %c0_74 = arith.constant 0 : index
    %c0_75 = arith.constant 0 : index
    %223 = vector.load %arg7[%c1_73, %c0_74, %c0_75] : memref<2x2x32xf32, #tpu.memory_space<vmem>>, vector<1x2x32xf32>
    %224 = vector.shape_cast %223 : vector<1x2x32xf32> to vector<2x32xf32>
    %225 = vector.shape_cast %208 : vector<2x32xf32> to vector<1x2x32xf32>
    tpu.vector_store %arg7[%c1_73, %c0_74, %c0_75], %225 {strides = array<i32>} : memref<2x2x32xf32, #tpu.memory_space<vmem>>, vector<1x2x32xf32>,
    %c1_76 = arith.constant 1 : index
    %c0_77 = arith.constant 0 : index
    %c0_78 = arith.constant 0 : index
    %226 = vector.load %arg8[%c1_76, %c0_77, %c0_78] : memref<2x2x32xf32, #tpu.memory_space<vmem>>, vector<1x2x32xf32>
    %227 = vector.shape_cast %226 : vector<1x2x32xf32> to vector<2x32xf32>
    %228 = vector.shape_cast %206 : vector<2x32xf32> to vector<1x2x32xf32>
    tpu.vector_store %arg8[%c1_76, %c0_77, %c0_78], %228 {strides = array<i32>} : memref<2x2x32xf32, #tpu.memory_space<vmem>>, vector<1x2x32xf32>,
    return
  }
  func.func @transform_0(%arg0: i32) -> (i32, i32, i32) {
    %c0_i32 = arith.constant 0 : i32
    %c0_i32_0 = arith.constant 0 : i32
    %c0_i32_1 = arith.constant 0 : i32
    return %arg0, %c0_i32, %c0_i32_0 : i32, i32, i32
  }
  func.func @transform_1(%arg0: i32) -> (i32, i32, i32) {
    %c1_i32 = arith.constant 1 : i32
    %0 = arith.subi %c1_i32, %arg0 : i32
    %c0_i32 = arith.constant 0 : i32
    %c0_i32_0 = arith.constant 0 : i32
    %c0_i32_1 = arith.constant 0 : i32
    return %0, %c0_i32, %c0_i32_0 : i32, i32, i32
  }
  func.func @transform_2(%arg0: i32) -> (i32, i32) {
    %c0_i32 = arith.constant 0 : i32
    %c0_i32_0 = arith.constant 0 : i32
    %c0_i32_1 = arith.constant 0 : i32
    return %c0_i32, %c0_i32_0 : i32, i32
  }
  func.func @transform_3(%arg0: i32) -> (i32, i32) {
    %c0_i32 = arith.constant 0 : i32
    %c0_i32_0 = arith.constant 0 : i32
    %c0_i32_1 = arith.constant 0 : i32
    return %c0_i32, %c0_i32_0 : i32, i32
  }
  func.func @transform_4(%arg0: i32) -> (i32, i32, i32) {
    %c0_i32 = arith.constant 0 : i32
    %c0_i32_0 = arith.constant 0 : i32
    %c0_i32_1 = arith.constant 0 : i32
    return %arg0, %c0_i32, %c0_i32_0 : i32, i32, i32
  }
  func.func @transform_5(%arg0: i32) -> (i32, i32, i32) {
    %c1_i32 = arith.constant 1 : i32
    %0 = arith.subi %c1_i32, %arg0 : i32
    %c0_i32 = arith.constant 0 : i32
    %c0_i32_0 = arith.constant 0 : i32
    %c0_i32_1 = arith.constant 0 : i32
    return %0, %c0_i32, %c0_i32_0 : i32, i32, i32
  }
}

module attributes {stable_mosaic.version = 11 : i64} {
  func.func @kernel(%arg0: i32, %arg1: i32, %arg2: memref<16x4xf32, #tpu.memory_space<vmem>>, %arg3: memref<4x128xf32, #tpu.memory_space<vmem>>, %arg4: memref<4x128xf32, #tpu.memory_space<vmem>>, %arg5: memref<1x128xf32, #tpu.memory_space<vmem>>, %arg6: memref<1x128xf32, #tpu.memory_space<vmem>>, %arg7: memref<16x128xf32, #tpu.memory_space<vmem>>, %arg8: memref<16x128xf32, #tpu.memory_space<vmem>>) attributes {dimension_semantics = [#tpu.dimension_semantics<parallel>, #tpu.dimension_semantics<parallel>], iteration_bounds = array<i64: 1, 1>, scalar_prefetch = 0 : i64, scratch_operands = 0 : i64, tpu.core_type = #tpu.core_type<tc>, window_params = [{transform_indices = @transform_0, window_bounds = array<i64: 16, 4>}, {transform_indices = @transform_1, window_bounds = array<i64: 4, 128>}, {transform_indices = @transform_2, window_bounds = array<i64: 4, 128>}, {transform_indices = @transform_3, window_bounds = array<i64: 1, 128>}, {transform_indices = @transform_4, window_bounds = array<i64: 1, 128>}, {transform_indices = @transform_5, window_bounds = array<i64: 16, 128>}, {transform_indices = @transform_6, window_bounds = array<i64: 16, 128>}]} {
    %c0 = arith.constant 0 : index
    %c0_0 = arith.constant 0 : index
    %0 = vector.load %arg2[%c0, %c0_0] : memref<16x4xf32, #tpu.memory_space<vmem>>, vector<16x4xf32>
    %c0_1 = arith.constant 0 : index
    %c0_2 = arith.constant 0 : index
    %1 = vector.load %arg5[%c0_1, %c0_2] : memref<1x128xf32, #tpu.memory_space<vmem>>, vector<1x128xf32>
    %c0_3 = arith.constant 0 : index
    %c0_4 = arith.constant 0 : index
    %2 = vector.load %arg3[%c0_3, %c0_4] : memref<4x128xf32, #tpu.memory_space<vmem>>, vector<4x128xf32>
    %cst = arith.constant dense<0.000000e+00> : vector<16x128xf32>
    %3 = tpu.matmul %0, %2, %cst {dimension_numbers = #tpu.dot_dimension_numbers<[1], [0], [0], [1], [0, 0, 1, 1], [], []>} : vector<16x4xf32>, vector<4x128xf32>, vector<16x128xf32> -> vector<16x128xf32>
    %4 = vector.broadcast %1 : vector<1x128xf32> to vector<16x128xf32>
    %5 = arith.addf %4, %3 : vector<16x128xf32>
    %c0_5 = arith.constant 0 : index
    %c0_6 = arith.constant 0 : index
    %6 = vector.load %arg7[%c0_5, %c0_6] : memref<16x128xf32, #tpu.memory_space<vmem>>, vector<16x128xf32>
    tpu.vector_store %arg7[%c0_5, %c0_6], %5 {strides = array<i32>} : memref<16x128xf32, #tpu.memory_space<vmem>>, vector<16x128xf32>,
    %c0_7 = arith.constant 0 : index
    %c0_8 = arith.constant 0 : index
    %7 = vector.load %arg6[%c0_7, %c0_8] : memref<1x128xf32, #tpu.memory_space<vmem>>, vector<1x128xf32>
    %c0_9 = arith.constant 0 : index
    %c0_10 = arith.constant 0 : index
    %8 = vector.load %arg4[%c0_9, %c0_10] : memref<4x128xf32, #tpu.memory_space<vmem>>, vector<4x128xf32>
    %cst_11 = arith.constant dense<0.000000e+00> : vector<16x128xf32>
    %9 = tpu.matmul %0, %8, %cst_11 {dimension_numbers = #tpu.dot_dimension_numbers<[1], [0], [0], [1], [0, 0, 1, 1], [], []>} : vector<16x4xf32>, vector<4x128xf32>, vector<16x128xf32> -> vector<16x128xf32>
    %10 = vector.broadcast %7 : vector<1x128xf32> to vector<16x128xf32>
    %11 = arith.addf %10, %9 : vector<16x128xf32>
    %c0_12 = arith.constant 0 : index
    %c0_13 = arith.constant 0 : index
    %12 = vector.load %arg8[%c0_12, %c0_13] : memref<16x128xf32, #tpu.memory_space<vmem>>, vector<16x128xf32>
    tpu.vector_store %arg8[%c0_12, %c0_13], %11 {strides = array<i32>} : memref<16x128xf32, #tpu.memory_space<vmem>>, vector<16x128xf32>,
    return
  }
  func.func @transform_0(%arg0: i32, %arg1: i32) -> (i32, i32) {
    %c0_i32 = arith.constant 0 : i32
    %c0_i32_0 = arith.constant 0 : i32
    return %arg0, %c0_i32 : i32, i32
  }
  func.func @transform_1(%arg0: i32, %arg1: i32) -> (i32, i32) {
    %c0_i32 = arith.constant 0 : i32
    %c0_i32_0 = arith.constant 0 : i32
    return %c0_i32, %arg1 : i32, i32
  }
  func.func @transform_2(%arg0: i32, %arg1: i32) -> (i32, i32) {
    %c0_i32 = arith.constant 0 : i32
    %c0_i32_0 = arith.constant 0 : i32
    return %c0_i32, %arg1 : i32, i32
  }
  func.func @transform_3(%arg0: i32, %arg1: i32) -> (i32, i32) {
    %c0_i32 = arith.constant 0 : i32
    %c0_i32_0 = arith.constant 0 : i32
    return %c0_i32, %arg1 : i32, i32
  }
  func.func @transform_4(%arg0: i32, %arg1: i32) -> (i32, i32) {
    %c0_i32 = arith.constant 0 : i32
    %c0_i32_0 = arith.constant 0 : i32
    return %c0_i32, %arg1 : i32, i32
  }
  func.func @transform_5(%arg0: i32, %arg1: i32) -> (i32, i32) {
    %c0_i32 = arith.constant 0 : i32
    return %arg0, %arg1 : i32, i32
  }
  func.func @transform_6(%arg0: i32, %arg1: i32) -> (i32, i32) {
    %c0_i32 = arith.constant 0 : i32
    return %arg0, %arg1 : i32, i32
  }
}

module attributes {stable_mosaic.version = 11 : i64} {
  func.func @kernel(%arg0: i32, %arg1: i32, %arg2: memref<16x32xf32, #tpu.memory_space<vmem>>, %arg3: memref<16x32xf32, #tpu.memory_space<vmem>>, %arg4: memref<32x128xf32, #tpu.memory_space<vmem>>, %arg5: memref<32x128xf32, #tpu.memory_space<vmem>>, %arg6: memref<1x128xf32, #tpu.memory_space<vmem>>, %arg7: memref<16x128xf32, #tpu.memory_space<vmem>>) attributes {dimension_semantics = [#tpu.dimension_semantics<parallel>, #tpu.dimension_semantics<parallel>], iteration_bounds = array<i64: 1, 1>, scalar_prefetch = 0 : i64, scratch_operands = 0 : i64, tpu.core_type = #tpu.core_type<tc>, window_params = [{transform_indices = @transform_0, window_bounds = array<i64: 16, 32>}, {transform_indices = @transform_1, window_bounds = array<i64: 16, 32>}, {transform_indices = @transform_2, window_bounds = array<i64: 32, 128>}, {transform_indices = @transform_3, window_bounds = array<i64: 32, 128>}, {transform_indices = @transform_4, window_bounds = array<i64: 1, 128>}, {transform_indices = @transform_5, window_bounds = array<i64: 16, 128>}]} {
    %c0 = arith.constant 0 : index
    %c0_0 = arith.constant 0 : index
    %0 = vector.load %arg2[%c0, %c0_0] : memref<16x32xf32, #tpu.memory_space<vmem>>, vector<16x32xf32>
    %c0_1 = arith.constant 0 : index
    %c0_2 = arith.constant 0 : index
    %1 = vector.load %arg3[%c0_1, %c0_2] : memref<16x32xf32, #tpu.memory_space<vmem>>, vector<16x32xf32>
    %c0_3 = arith.constant 0 : index
    %c0_4 = arith.constant 0 : index
    %2 = vector.load %arg6[%c0_3, %c0_4] : memref<1x128xf32, #tpu.memory_space<vmem>>, vector<1x128xf32>
    %c0_5 = arith.constant 0 : index
    %c0_6 = arith.constant 0 : index
    %3 = vector.load %arg4[%c0_5, %c0_6] : memref<32x128xf32, #tpu.memory_space<vmem>>, vector<32x128xf32>
    %cst = arith.constant dense<0.000000e+00> : vector<16x128xf32>
    %4 = tpu.matmul %0, %3, %cst {dimension_numbers = #tpu.dot_dimension_numbers<[1], [0], [0], [1], [0, 0, 1, 1], [], []>} : vector<16x32xf32>, vector<32x128xf32>, vector<16x128xf32> -> vector<16x128xf32>
    %5 = vector.broadcast %2 : vector<1x128xf32> to vector<16x128xf32>
    %6 = arith.addf %5, %4 : vector<16x128xf32>
    %c0_7 = arith.constant 0 : index
    %c0_8 = arith.constant 0 : index
    %7 = vector.load %arg5[%c0_7, %c0_8] : memref<32x128xf32, #tpu.memory_space<vmem>>, vector<32x128xf32>
    %cst_9 = arith.constant dense<0.000000e+00> : vector<16x128xf32>
    %8 = tpu.matmul %1, %7, %cst_9 {dimension_numbers = #tpu.dot_dimension_numbers<[1], [0], [0], [1], [0, 0, 1, 1], [], []>} : vector<16x32xf32>, vector<32x128xf32>, vector<16x128xf32> -> vector<16x128xf32>
    %9 = arith.addf %6, %8 : vector<16x128xf32>
    %c0_10 = arith.constant 0 : index
    %c0_11 = arith.constant 0 : index
    %10 = vector.load %arg7[%c0_10, %c0_11] : memref<16x128xf32, #tpu.memory_space<vmem>>, vector<16x128xf32>
    tpu.vector_store %arg7[%c0_10, %c0_11], %9 {strides = array<i32>} : memref<16x128xf32, #tpu.memory_space<vmem>>, vector<16x128xf32>,
    return
  }
  func.func @transform_0(%arg0: i32, %arg1: i32) -> (i32, i32) {
    %c0_i32 = arith.constant 0 : i32
    %c0_i32_0 = arith.constant 0 : i32
    return %arg0, %c0_i32 : i32, i32
  }
  func.func @transform_1(%arg0: i32, %arg1: i32) -> (i32, i32) {
    %c0_i32 = arith.constant 0 : i32
    %c0_i32_0 = arith.constant 0 : i32
    return %arg0, %c0_i32 : i32, i32
  }
  func.func @transform_2(%arg0: i32, %arg1: i32) -> (i32, i32) {
    %c0_i32 = arith.constant 0 : i32
    %c0_i32_0 = arith.constant 0 : i32
    return %c0_i32, %arg1 : i32, i32
  }
  func.func @transform_3(%arg0: i32, %arg1: i32) -> (i32, i32) {
    %c0_i32 = arith.constant 0 : i32
    %c0_i32_0 = arith.constant 0 : i32
    return %c0_i32, %arg1 : i32, i32
  }
  func.func @transform_4(%arg0: i32, %arg1: i32) -> (i32, i32) {
    %c0_i32 = arith.constant 0 : i32
    %c0_i32_0 = arith.constant 0 : i32
    return %c0_i32, %arg1 : i32, i32
  }
  func.func @transform_5(%arg0: i32, %arg1: i32) -> (i32, i32) {
    %c0_i32 = arith.constant 0 : i32
    return %arg0, %arg1 : i32, i32
  }
}

module attributes {stable_mosaic.version = 11 : i64} {
  func.func @_bilstm_last_kernel(%arg0: i32, %arg1: memref<4x2x128xf32, #tpu.memory_space<vmem>>, %arg2: memref<2x128xf32, #tpu.memory_space<vmem>>, %arg3: memref<32x128xf32, #tpu.memory_space<vmem>>, %arg4: memref<32x1xf32, #tpu.memory_space<vmem>>, %arg5: memref<32x1xf32, #tpu.memory_space<vmem>>, %arg6: memref<1x1xf32, #tpu.memory_space<vmem>>, %arg7: memref<2x1xf32, #tpu.memory_space<vmem>>, %arg8: memref<2x32xf32, #tpu.memory_space<vmem>>, %arg9: memref<2x32xf32, #tpu.memory_space<vmem>>) attributes {dimension_semantics = [#tpu.dimension_semantics<arbitrary>], iteration_bounds = array<i64: 2>, scalar_prefetch = 0 : i64, scratch_operands = 2 : i64, tpu.core_type = #tpu.core_type<tc>, window_params = [{transform_indices = @transform_0, window_bounds = array<i64: 4, 2, 128>}, {pipeline_mode = #tpu.pipeline_mode<synchronous>, transform_indices = @transform_1, window_bounds = array<i64: 2, 128>}, {pipeline_mode = #tpu.pipeline_mode<synchronous>, transform_indices = @transform_2, window_bounds = array<i64: 32, 128>}, {pipeline_mode = #tpu.pipeline_mode<synchronous>, transform_indices = @transform_3, window_bounds = array<i64: 32, 1>}, {pipeline_mode = #tpu.pipeline_mode<synchronous>, transform_indices = @transform_4, window_bounds = array<i64: 32, 1>}, {pipeline_mode = #tpu.pipeline_mode<synchronous>, transform_indices = @transform_5, window_bounds = array<i64: 1, 1>}, {pipeline_mode = #tpu.pipeline_mode<synchronous>, transform_indices = @transform_6, window_bounds = array<i64: 2, 1>}]} {
    %c0_i32 = arith.constant 0 : i32
    %0 = arith.cmpi eq, %arg0, %c0_i32 : i32
    %1 = arith.extui %0 : i1 to i32
    %c0_i32_0 = arith.constant 0 : i32
    %2 = arith.cmpi ne, %1, %c0_i32_0 : i32
    scf.if %2 {
      %cst_28 = arith.constant 0.000000e+00 : f32
      %95 = vector.broadcast %cst_28 : f32 to vector<2x32xf32>
      %c0_29 = arith.constant 0 : index
      %c0_30 = arith.constant 0 : index
      %96 = vector.load %arg8[%c0_29, %c0_30] : memref<2x32xf32, #tpu.memory_space<vmem>>, vector<2x32xf32>
      tpu.vector_store %arg8[%c0_29, %c0_30], %95 {strides = array<i32>} : memref<2x32xf32, #tpu.memory_space<vmem>>, vector<2x32xf32>,
      %cst_31 = arith.constant 0.000000e+00 : f32
      %97 = vector.broadcast %cst_31 : f32 to vector<2x32xf32>
      %c0_32 = arith.constant 0 : index
      %c0_33 = arith.constant 0 : index
      %98 = vector.load %arg9[%c0_32, %c0_33] : memref<2x32xf32, #tpu.memory_space<vmem>>, vector<2x32xf32>
      tpu.vector_store %arg9[%c0_32, %c0_33], %97 {strides = array<i32>} : memref<2x32xf32, #tpu.memory_space<vmem>>, vector<2x32xf32>,
    } else {
    }
    %c0 = arith.constant 0 : index
    %c0_1 = arith.constant 0 : index
    %3 = vector.load %arg3[%c0, %c0_1] : memref<32x128xf32, #tpu.memory_space<vmem>>, vector<32x128xf32>
    %c0_2 = arith.constant 0 : index
    %c0_3 = arith.constant 0 : index
    %4 = vector.load %arg8[%c0_2, %c0_3] : memref<2x32xf32, #tpu.memory_space<vmem>>, vector<2x32xf32>
    %c0_4 = arith.constant 0 : index
    %c0_5 = arith.constant 0 : index
    %5 = vector.load %arg9[%c0_4, %c0_5] : memref<2x32xf32, #tpu.memory_space<vmem>>, vector<2x32xf32>
    %c0_i32_6 = arith.constant 0 : i32
    %cst = arith.constant dense<0.000000e+00> : vector<2x128xf32>
    %6 = tpu.matmul %4, %3, %cst {dimension_numbers = #tpu.dot_dimension_numbers<[1], [0], [0], [1], [0, 0, 1, 1], [], []>} : vector<2x32xf32>, vector<32x128xf32>, vector<2x128xf32> -> vector<2x128xf32>
    %7 = arith.index_cast %c0_i32_6 : i32 to index
    %c0_7 = arith.constant 0 : index
    %c0_8 = arith.constant 0 : index
    %8 = vector.load %arg1[%7, %c0_7, %c0_8] : memref<4x2x128xf32, #tpu.memory_space<vmem>>, vector<1x2x128xf32>
    %9 = vector.shape_cast %8 : vector<1x2x128xf32> to vector<2x128xf32>
    %10 = arith.addf %9, %6 : vector<2x128xf32>
    %11 = vector.extract_strided_slice %10 {offsets = [0, 0], sizes = [2, 96], strides = [1, 1]} : vector<2x128xf32> to vector<2x96xf32>
    %12 = arith.negf %11 : vector<2x96xf32>
    %13 = math.exp %12 : vector<2x96xf32>
    %cst_9 = arith.constant 1.000000e+00 : f32
    %14 = vector.broadcast %cst_9 : f32 to vector<2x96xf32>
    %15 = arith.addf %14, %13 : vector<2x96xf32>
    %16 = arith.divf %14, %15 : vector<2x96xf32>
    %17 = vector.extract_strided_slice %10 {offsets = [0, 96], sizes = [2, 32], strides = [1, 1]} : vector<2x128xf32> to vector<2x32xf32>
    %18 = math.tanh %17 : vector<2x32xf32>
    %19 = vector.extract_strided_slice %16 {offsets = [0, 0], sizes = [2, 32], strides = [1, 1]} : vector<2x96xf32> to vector<2x32xf32>
    %20 = vector.extract_strided_slice %16 {offsets = [0, 32], sizes = [2, 32], strides = [1, 1]} : vector<2x96xf32> to vector<2x32xf32>
    %21 = vector.extract_strided_slice %16 {offsets = [0, 64], sizes = [2, 32], strides = [1, 1]} : vector<2x96xf32> to vector<2x32xf32>
    %22 = arith.mulf %20, %5 : vector<2x32xf32>
    %23 = arith.mulf %19, %18 : vector<2x32xf32>
    %24 = arith.addf %22, %23 : vector<2x32xf32>
    %25 = math.tanh %24 : vector<2x32xf32>
    %26 = arith.mulf %21, %25 : vector<2x32xf32>
    %c1_i32 = arith.constant 1 : i32
    %cst_10 = arith.constant dense<0.000000e+00> : vector<2x128xf32>
    %27 = tpu.matmul %26, %3, %cst_10 {dimension_numbers = #tpu.dot_dimension_numbers<[1], [0], [0], [1], [0, 0, 1, 1], [], []>} : vector<2x32xf32>, vector<32x128xf32>, vector<2x128xf32> -> vector<2x128xf32>
    %28 = arith.index_cast %c1_i32 : i32 to index
    %c0_11 = arith.constant 0 : index
    %c0_12 = arith.constant 0 : index
    %29 = vector.load %arg1[%28, %c0_11, %c0_12] : memref<4x2x128xf32, #tpu.memory_space<vmem>>, vector<1x2x128xf32>
    %30 = vector.shape_cast %29 : vector<1x2x128xf32> to vector<2x128xf32>
    %31 = arith.addf %30, %27 : vector<2x128xf32>
    %32 = vector.extract_strided_slice %31 {offsets = [0, 0], sizes = [2, 96], strides = [1, 1]} : vector<2x128xf32> to vector<2x96xf32>
    %33 = arith.negf %32 : vector<2x96xf32>
    %34 = math.exp %33 : vector<2x96xf32>
    %cst_13 = arith.constant 1.000000e+00 : f32
    %35 = vector.broadcast %cst_13 : f32 to vector<2x96xf32>
    %36 = arith.addf %35, %34 : vector<2x96xf32>
    %37 = arith.divf %35, %36 : vector<2x96xf32>
    %38 = vector.extract_strided_slice %31 {offsets = [0, 96], sizes = [2, 32], strides = [1, 1]} : vector<2x128xf32> to vector<2x32xf32>
    %39 = math.tanh %38 : vector<2x32xf32>
    %40 = vector.extract_strided_slice %37 {offsets = [0, 0], sizes = [2, 32], strides = [1, 1]} : vector<2x96xf32> to vector<2x32xf32>
    %41 = vector.extract_strided_slice %37 {offsets = [0, 32], sizes = [2, 32], strides = [1, 1]} : vector<2x96xf32> to vector<2x32xf32>
    %42 = vector.extract_strided_slice %37 {offsets = [0, 64], sizes = [2, 32], strides = [1, 1]} : vector<2x96xf32> to vector<2x32xf32>
    %43 = arith.mulf %41, %24 : vector<2x32xf32>
    %44 = arith.mulf %40, %39 : vector<2x32xf32>
    %45 = arith.addf %43, %44 : vector<2x32xf32>
    %46 = math.tanh %45 : vector<2x32xf32>
    %47 = arith.mulf %42, %46 : vector<2x32xf32>
    %c2_i32 = arith.constant 2 : i32
    %cst_14 = arith.constant dense<0.000000e+00> : vector<2x128xf32>
    %48 = tpu.matmul %47, %3, %cst_14 {dimension_numbers = #tpu.dot_dimension_numbers<[1], [0], [0], [1], [0, 0, 1, 1], [], []>} : vector<2x32xf32>, vector<32x128xf32>, vector<2x128xf32> -> vector<2x128xf32>
    %49 = arith.index_cast %c2_i32 : i32 to index
    %c0_15 = arith.constant 0 : index
    %c0_16 = arith.constant 0 : index
    %50 = vector.load %arg1[%49, %c0_15, %c0_16] : memref<4x2x128xf32, #tpu.memory_space<vmem>>, vector<1x2x128xf32>
    %51 = vector.shape_cast %50 : vector<1x2x128xf32> to vector<2x128xf32>
    %52 = arith.addf %51, %48 : vector<2x128xf32>
    %53 = vector.extract_strided_slice %52 {offsets = [0, 0], sizes = [2, 96], strides = [1, 1]} : vector<2x128xf32> to vector<2x96xf32>
    %54 = arith.negf %53 : vector<2x96xf32>
    %55 = math.exp %54 : vector<2x96xf32>
    %cst_17 = arith.constant 1.000000e+00 : f32
    %56 = vector.broadcast %cst_17 : f32 to vector<2x96xf32>
    %57 = arith.addf %56, %55 : vector<2x96xf32>
    %58 = arith.divf %56, %57 : vector<2x96xf32>
    %59 = vector.extract_strided_slice %52 {offsets = [0, 96], sizes = [2, 32], strides = [1, 1]} : vector<2x128xf32> to vector<2x32xf32>
    %60 = math.tanh %59 : vector<2x32xf32>
    %61 = vector.extract_strided_slice %58 {offsets = [0, 0], sizes = [2, 32], strides = [1, 1]} : vector<2x96xf32> to vector<2x32xf32>
    %62 = vector.extract_strided_slice %58 {offsets = [0, 32], sizes = [2, 32], strides = [1, 1]} : vector<2x96xf32> to vector<2x32xf32>
    %63 = vector.extract_strided_slice %58 {offsets = [0, 64], sizes = [2, 32], strides = [1, 1]} : vector<2x96xf32> to vector<2x32xf32>
    %64 = arith.mulf %62, %45 : vector<2x32xf32>
    %65 = arith.mulf %61, %60 : vector<2x32xf32>
    %66 = arith.addf %64, %65 : vector<2x32xf32>
    %67 = math.tanh %66 : vector<2x32xf32>
    %68 = arith.mulf %63, %67 : vector<2x32xf32>
    %c3_i32 = arith.constant 3 : i32
    %cst_18 = arith.constant dense<0.000000e+00> : vector<2x128xf32>
    %69 = tpu.matmul %68, %3, %cst_18 {dimension_numbers = #tpu.dot_dimension_numbers<[1], [0], [0], [1], [0, 0, 1, 1], [], []>} : vector<2x32xf32>, vector<32x128xf32>, vector<2x128xf32> -> vector<2x128xf32>
    %70 = arith.index_cast %c3_i32 : i32 to index
    %c0_19 = arith.constant 0 : index
    %c0_20 = arith.constant 0 : index
    %71 = vector.load %arg1[%70, %c0_19, %c0_20] : memref<4x2x128xf32, #tpu.memory_space<vmem>>, vector<1x2x128xf32>
    %72 = vector.shape_cast %71 : vector<1x2x128xf32> to vector<2x128xf32>
    %73 = arith.addf %72, %69 : vector<2x128xf32>
    %74 = vector.extract_strided_slice %73 {offsets = [0, 0], sizes = [2, 96], strides = [1, 1]} : vector<2x128xf32> to vector<2x96xf32>
    %75 = arith.negf %74 : vector<2x96xf32>
    %76 = math.exp %75 : vector<2x96xf32>
    %cst_21 = arith.constant 1.000000e+00 : f32
    %77 = vector.broadcast %cst_21 : f32 to vector<2x96xf32>
    %78 = arith.addf %77, %76 : vector<2x96xf32>
    %79 = arith.divf %77, %78 : vector<2x96xf32>
    %80 = vector.extract_strided_slice %73 {offsets = [0, 96], sizes = [2, 32], strides = [1, 1]} : vector<2x128xf32> to vector<2x32xf32>
    %81 = math.tanh %80 : vector<2x32xf32>
    %82 = vector.extract_strided_slice %79 {offsets = [0, 0], sizes = [2, 32], strides = [1, 1]} : vector<2x96xf32> to vector<2x32xf32>
    %83 = vector.extract_strided_slice %79 {offsets = [0, 32], sizes = [2, 32], strides = [1, 1]} : vector<2x96xf32> to vector<2x32xf32>
    %84 = vector.extract_strided_slice %79 {offsets = [0, 64], sizes = [2, 32], strides = [1, 1]} : vector<2x96xf32> to vector<2x32xf32>
    %85 = arith.mulf %83, %66 : vector<2x32xf32>
    %86 = arith.mulf %82, %81 : vector<2x32xf32>
    %87 = arith.addf %85, %86 : vector<2x32xf32>
    %88 = math.tanh %87 : vector<2x32xf32>
    %89 = arith.mulf %84, %88 : vector<2x32xf32>
    %c4_i32 = arith.constant 4 : i32
    %c0_22 = arith.constant 0 : index
    %c0_23 = arith.constant 0 : index
    %90 = vector.load %arg8[%c0_22, %c0_23] : memref<2x32xf32, #tpu.memory_space<vmem>>, vector<2x32xf32>
    tpu.vector_store %arg8[%c0_22, %c0_23], %89 {strides = array<i32>} : memref<2x32xf32, #tpu.memory_space<vmem>>, vector<2x32xf32>,
    %c0_24 = arith.constant 0 : index
    %c0_25 = arith.constant 0 : index
    %91 = vector.load %arg9[%c0_24, %c0_25] : memref<2x32xf32, #tpu.memory_space<vmem>>, vector<2x32xf32>
    tpu.vector_store %arg9[%c0_24, %c0_25], %87 {strides = array<i32>} : memref<2x32xf32, #tpu.memory_space<vmem>>, vector<2x32xf32>,
    %c1_i32_26 = arith.constant 1 : i32
    %92 = arith.cmpi eq, %arg0, %c1_i32_26 : i32
    %93 = arith.extui %92 : i1 to i32
    %c0_i32_27 = arith.constant 0 : i32
    %94 = arith.cmpi ne, %93, %c0_i32_27 : i32
    scf.if %94 {
      %c0_28 = arith.constant 0 : index
      %c0_29 = arith.constant 0 : index
      %95 = vector.load %arg2[%c0_28, %c0_29] : memref<2x128xf32, #tpu.memory_space<vmem>>, vector<2x128xf32>
      %cst_30 = arith.constant 0.000000e+00 : f32
      %96 = vector.broadcast %cst_30 : f32 to vector<2x32xf32>
      %97 = vector.extract_strided_slice %95 {offsets = [0, 0], sizes = [2, 96], strides = [1, 1]} : vector<2x128xf32> to vector<2x96xf32>
      %98 = arith.negf %97 : vector<2x96xf32>
      %99 = math.exp %98 : vector<2x96xf32>
      %cst_31 = arith.constant 1.000000e+00 : f32
      %100 = vector.broadcast %cst_31 : f32 to vector<2x96xf32>
      %101 = arith.addf %100, %99 : vector<2x96xf32>
      %102 = arith.divf %100, %101 : vector<2x96xf32>
      %103 = vector.extract_strided_slice %95 {offsets = [0, 96], sizes = [2, 32], strides = [1, 1]} : vector<2x128xf32> to vector<2x32xf32>
      %104 = math.tanh %103 : vector<2x32xf32>
      %105 = vector.extract_strided_slice %102 {offsets = [0, 0], sizes = [2, 32], strides = [1, 1]} : vector<2x96xf32> to vector<2x32xf32>
      %106 = vector.extract_strided_slice %102 {offsets = [0, 32], sizes = [2, 32], strides = [1, 1]} : vector<2x96xf32> to vector<2x32xf32>
      %107 = vector.extract_strided_slice %102 {offsets = [0, 64], sizes = [2, 32], strides = [1, 1]} : vector<2x96xf32> to vector<2x32xf32>
      %108 = arith.mulf %106, %96 : vector<2x32xf32>
      %109 = arith.mulf %105, %104 : vector<2x32xf32>
      %110 = arith.addf %108, %109 : vector<2x32xf32>
      %111 = math.tanh %110 : vector<2x32xf32>
      %112 = arith.mulf %107, %111 : vector<2x32xf32>
      %c0_32 = arith.constant 0 : index
      %c0_33 = arith.constant 0 : index
      %113 = vector.load %arg4[%c0_32, %c0_33] : memref<32x1xf32, #tpu.memory_space<vmem>>, vector<32x1xf32>
      %cst_34 = arith.constant dense<0.000000e+00> : vector<2x1xf32>
      %114 = tpu.matmul %89, %113, %cst_34 {dimension_numbers = #tpu.dot_dimension_numbers<[1], [0], [0], [1], [0, 0, 1, 1], [], []>} : vector<2x32xf32>, vector<32x1xf32>, vector<2x1xf32> -> vector<2x1xf32>
      %c0_35 = arith.constant 0 : index
      %c0_36 = arith.constant 0 : index
      %115 = vector.load %arg5[%c0_35, %c0_36] : memref<32x1xf32, #tpu.memory_space<vmem>>, vector<32x1xf32>
      %cst_37 = arith.constant dense<0.000000e+00> : vector<2x1xf32>
      %116 = tpu.matmul %112, %115, %cst_37 {dimension_numbers = #tpu.dot_dimension_numbers<[1], [0], [0], [1], [0, 0, 1, 1], [], []>} : vector<2x32xf32>, vector<32x1xf32>, vector<2x1xf32> -> vector<2x1xf32>
      %117 = arith.addf %114, %116 : vector<2x1xf32>
      %c0_38 = arith.constant 0 : index
      %c0_39 = arith.constant 0 : index
      %118 = vector.load %arg6[%c0_38, %c0_39] : memref<1x1xf32, #tpu.memory_space<vmem>>, vector<1x1xf32>
      %119 = vector.broadcast %118 : vector<1x1xf32> to vector<2x1xf32>
      %120 = arith.addf %117, %119 : vector<2x1xf32>
      %c0_40 = arith.constant 0 : index
      %c0_41 = arith.constant 0 : index
      %121 = vector.load %arg7[%c0_40, %c0_41] : memref<2x1xf32, #tpu.memory_space<vmem>>, vector<2x1xf32>
      tpu.vector_store %arg7[%c0_40, %c0_41], %120 {strides = array<i32>} : memref<2x1xf32, #tpu.memory_space<vmem>>, vector<2x1xf32>,
    } else {
    }
    return
  }
  func.func @transform_0(%arg0: i32) -> (i32, i32, i32) {
    %c0_i32 = arith.constant 0 : i32
    %c0_i32_0 = arith.constant 0 : i32
    %c0_i32_1 = arith.constant 0 : i32
    return %arg0, %c0_i32, %c0_i32_0 : i32, i32, i32
  }
  func.func @transform_1(%arg0: i32) -> (i32, i32) {
    %c0_i32 = arith.constant 0 : i32
    %c0_i32_0 = arith.constant 0 : i32
    %c0_i32_1 = arith.constant 0 : i32
    return %c0_i32, %c0_i32_0 : i32, i32
  }
  func.func @transform_2(%arg0: i32) -> (i32, i32) {
    %c0_i32 = arith.constant 0 : i32
    %c0_i32_0 = arith.constant 0 : i32
    %c0_i32_1 = arith.constant 0 : i32
    return %c0_i32, %c0_i32_0 : i32, i32
  }
  func.func @transform_3(%arg0: i32) -> (i32, i32) {
    %c0_i32 = arith.constant 0 : i32
    %c0_i32_0 = arith.constant 0 : i32
    %c0_i32_1 = arith.constant 0 : i32
    return %c0_i32, %c0_i32_0 : i32, i32
  }
  func.func @transform_4(%arg0: i32) -> (i32, i32) {
    %c0_i32 = arith.constant 0 : i32
    %c0_i32_0 = arith.constant 0 : i32
    %c0_i32_1 = arith.constant 0 : i32
    return %c0_i32, %c0_i32_0 : i32, i32
  }
  func.func @transform_5(%arg0: i32) -> (i32, i32) {
    %c0_i32 = arith.constant 0 : i32
    %c0_i32_0 = arith.constant 0 : i32
    %c0_i32_1 = arith.constant 0 : i32
    return %c0_i32, %c0_i32_0 : i32, i32
  }
  func.func @transform_6(%arg0: i32) -> (i32, i32) {
    %c0_i32 = arith.constant 0 : i32
    %c0_i32_0 = arith.constant 0 : i32
    %c0_i32_1 = arith.constant 0 : i32
    return %c0_i32, %c0_i32_0 : i32, i32
  }
}

</mosaic_0001>

<bundles_post_ra>
// kernel: bilstm_forward.6
= control target key start
LH: loop header
LB: loop body
LE: loop exit
PB: predicated region body
PF: predicated region fallthrough
CT: control target
= control target key end

     0   :  { %vm29_vm0 = vcmask 261120   ;;  %s193_s2 = inlined_call_operand.vmem [shape: f32[32,128], index: 2, kind: input, shape index: {}]   ;;  %s194_s3 = inlined_call_operand.vmem [shape: f32[32,128], index: 3, kind: input, shape index: {}]   ;;  %s195_s0 = inlined_call_operand.vmem [shape: f32[16,32], index: 0, kind: input, shape index: {}]   ;;  %s196_s1 = inlined_call_operand.vmem [shape: f32[16,32], index: 1, kind: input, shape index: {}]   ;;  %s197_s4 = inlined_call_operand.vmem [shape: f32[1,128], index: 4, kind: input, shape index: {}]   ;;  %s198_s5 = inlined_call_operand.vmem [shape: f32[16,128], index: 5, kind: output, shape index: {}]  }
   0x1   :  { %v28_v0 = vld [vmem:[%s193_s2 + $0x18] sm:$0xff]  ;;  %v27_v1 = vld [vmem:[%s193_s2 + $0x10] sm:$0xff]  ;;  %v26_v4 = vld [vmem:[%s193_s2 + $0x8] sm:$0xff] }
   0x2   :  { %v67_v2 = vld [vmem:[%s194_s3 + $0x18] sm:$0xff]  ;;  %109 = vmatpush.msra.mxu2 %v28_v0  ;;  %v66_v3 = vld [vmem:[%s194_s3 + $0x10] sm:$0xff]  ;;  %48 = vmatpush.msra.mxu0 %v28_v0  ;;  %v65_v5 = vld [vmem:[%s194_s3 + $0x8] sm:$0xff] }
   0x3   :  { %113 = vmatpush.msra.mxu3 %v67_v2  ;;  %86 = vmatpush.msra.mxu1 %v67_v2  ;;  %v25_v6 = vld [vmem:[%s193_s2] sm:$0xff]  ;;  %v21_v8 = vld [vmem:[%s195_s0 + $0x8] sm:$0xff] }
   0x4   :  { %110 = vmatpush.msra.mxu2 %v27_v1  ;;  %49 = vmatpush.msra.mxu0 %v27_v1  ;;  %v64_v7 = vld [vmem:[%s194_s3] sm:$0xff]  ;;  %v23_v9 = vld [vmem:[%s196_s1 + $0x8] sm:$0xff] }
   0x5   :  { %114 = vmatpush.msra.mxu3 %v66_v3  ;;  %87 = vmatpush.msra.mxu1 %v66_v3  ;;  %v20_v10 = vld [vmem:[%s195_s0] sm:$0xff] }
   0x6   :  { %111 = vmatpush.msra.mxu2 %v26_v4  ;;  %50 = vmatpush.msra.mxu0 %v26_v4  ;;  %v22_v11 = vld [vmem:[%s196_s1] sm:$0xff] }
   0x7   :  { %115 = vmatpush.msra.mxu3 %v65_v5  ;;  %88 = vmatpush.msra.mxu1 %v65_v5  ;;  %v117_v12 = vld [vmem:[%s197_s4] ss:$0 sm:$0xff] }
   0x8   :  { %112 = vmatpush.msra.mxu2 %v25_v6  ;;  %51 = vmatpush.msra.mxu0 %v25_v6 }
   0x9   :  { %116 = vmatpush.msra.mxu3 %v64_v7  ;;  %106 = vmatmul.msk.f32.vlgmr.msra.gmra.mxu2 %vm29_vm0, %v21_v8 }
   0xa   :  { %108 = vmatmul.msk.f32.vlgmr.msra.gmra.mxu3 %vm29_vm0, %v23_v9  ;;  %89 = vmatpush.msra.mxu1 %v64_v7 }
   0xb   :  { %105 = vmatmul.msk.f32.vlgmr.msra.gmra.mxu0 %vm29_vm0, %v20_v10  ;;  %107 = vmatmul.msk.f32.vlgmr.msra.gmra.mxu1 %vm29_vm0, %v22_v11 }
  0x88   :  { %v53_v13 = vpop.f32.mrf.mxu0  ;;  %v91_v14 = vpop.f32.mrf.mxu1 }
  0x89   :  { %v62_v15 = vadd.f32 %v117_v12, %v53_v13 }
  0x8b   :  { %v97_v16 = vadd.f32 %v91_v14, %v62_v15 }
  0x8c   :  { %v56_v17 = vpop.f32.mrf.mxu2 }
  0x8d   :  { %v94_v18 = vpop.f32.mrf.mxu3  ;;  %v63_v19 = vadd.f32 %v117_v12, %v56_v17  ;;  %99 = vst [vmem:[%s198_s5] sm:$0xff] %v97_v16 }
  0x8f   :  { %v98_v20 = vadd.f32 %v94_v18, %v63_v19 }
  0x91   :  { %100 = vst [vmem:[%s198_s5 + $0x8] sm:$0xff] %v98_v20 }

// kernel: bilstm_forward.4
= control target key start
LH: loop header
LB: loop body
LE: loop exit
PB: predicated region body
PF: predicated region fallthrough
CT: control target
= control target key end

     0   :  { %12 = vsyncpa [#allocation3], 0  ;;  %s162_s24 = smov [#allocation2]   ;;  %s228_s0 = inlined_call_operand.vmem [shape: f32[16,4], index: 0, kind: input, shape index: {}]   ;;  %s229_s1 = inlined_call_operand.vmem [shape: f32[4,128], index: 1, kind: input, shape index: {}]   ;;  %s230_s2 = inlined_call_operand.vmem [shape: f32[4,128], index: 2, kind: input, shape index: {}]   ;;  %s231_s3 = inlined_call_operand.vmem [shape: f32[1,128], index: 3, kind: input, shape index: {}]   ;;  %s232_s4 = inlined_call_operand.hbm [shape: f32[1,128], index: 4, kind: input, shape index: {}]   ;;  %s233_s5 = inlined_call_operand.vmem [shape: f32[16,128], index: 5, kind: output, shape index: {0}]   ;;  %s234_s6 = inlined_call_operand.vmem [shape: f32[16,128], index: 6, kind: output, shape index: {1}]  }
   0x1   :  { %s26_s23 = sshll.u32 %s232_s4, 4  ;;  %s28_s25 = sshll.u32 %s162_s24, 4  ;;  %s27_s23 = int_to_ptr.hbm [resolvable:$true] %s26_s23  ;;  %s29_s25 = int_to_ptr.vmem [resolvable:$true] %s28_s25 }
   0x2   :  { %31 = dma.hbm_to_vmem [thread:$0]  %s27_s23, 16, %s29_s25, [#allocation3]  }
   0x3   :  { %160 = dma.done.wait [#allocation3], 16  }
   0x4   :  { %161 = vsyncadd [#allocation3], 4294967280  ;;  %vm47_vm0 = vcmask 1043456   ;;  %vm40_vm1 = vcmask 31744   ;;  %v39_v0 = vld [vmem:[%s229_s1] sm:$0xf] }
   0x5   :  { %v82_v1 = vld [vmem:[%s230_s2] sm:$0xf]  ;;  %v37_v2 = vld [vmem:[%s228_s0 + $0x8] sm:$0xff]  ;;  %131 = vmatpush.msk.msra.mxu2 %vm47_vm0, %v39_v0  ;;  %125 = vmatpush.msk.msra.mxu0 %vm47_vm0, %v39_v0 }
   0x6   :  { %132 = vmatpush.msk.msra.mxu3 %vm47_vm0, %v82_v1  ;;  %v36_v3 = vld [vmem:[%s228_s0] sm:$0xff]  ;;  %127 = vmatmul.msk.f32.vlgmr.msra.gmra.mxu2 %vm40_vm1, %v37_v2 }
   0x7   :  { %130 = vmatmul.msk.f32.vlgmr.msra.gmra.mxu3 %vm40_vm1, %v37_v2  ;;  %128 = vmatpush.msk.msra.mxu1 %vm47_vm0, %v82_v1  ;;  %v134_v4 = vld [vmem:[%s231_s3] ss:$0 sm:$0xff] }
   0x8   :  { %126 = vmatmul.msk.f32.vlgmr.msra.gmra.mxu0 %vm40_vm1, %v36_v3  ;;  %129 = vmatmul.msk.f32.vlgmr.msra.gmra.mxu1 %vm40_vm1, %v36_v3  ;;  %v135_v5 = vld [vmem:[#allocation2] ss:$0 sm:$0xff] }
  0x85   :  { %v68_v6 = vpop.f32.mrf.mxu0  ;;  %v103_v7 = vpop.f32.mrf.mxu1 }
  0x86   :  { %v77_v8 = vadd.f32 %v134_v4, %v68_v6  ;;  %v112_v9 = vadd.f32 %v135_v5, %v103_v7 }
  0x88   :  { %79 = vst [vmem:[%s233_s5] sm:$0xff] %v77_v8 }
  0x89   :  { %v71_v10 = vpop.f32.mrf.mxu2  ;;  %114 = vst [vmem:[%s234_s6] sm:$0xff] %v112_v9 }
  0x8a   :  { %v106_v11 = vpop.f32.mrf.mxu3  ;;  %v78_v12 = vadd.f32 %v134_v4, %v71_v10 }
  0x8b   :  { %v113_v13 = vadd.f32 %v135_v5, %v106_v11 }
  0x8c   :  { %80 = vst [vmem:[%s233_s5 + $0x8] sm:$0xff] %v78_v12 }
  0x8d   :  { %115 = vst [vmem:[%s234_s6 + $0x8] sm:$0xff] %v113_v13 }
  0x8e   :  { %124 = vsyncpa [#allocation3], 1 }

// kernel: bilstm_forward.5
= control target key start
LH: loop header
LB: loop body
LE: loop exit
PB: predicated region body
PF: predicated region fallthrough
CT: control target
= control target key end

     0   :  { %11 = vsyncpa [#allocation5], 0  ;;  %s1442_s0 = inlined_call_operand.vmem [shape: f32[8,2,128], index: 0, kind: input, shape index: {}]   ;;  %s1443_s1 = inlined_call_operand.vmem [shape: f32[8,2,128], index: 1, kind: input, shape index: {}]   ;;  %s1444_s2 = inlined_call_operand.hbm [shape: f32[32,128], index: 2, kind: input, shape index: {}]   ;;  %s1445_s3 = inlined_call_operand.hbm [shape: f32[32,128], index: 3, kind: input, shape index: {}]   ;;  %s1446_s4 = inlined_call_operand.vmem [shape: f32[8,2,32], index: 4, kind: output, shape index: {0}]   ;;  %s1447_s5 = inlined_call_operand.vmem [shape: f32[8,2,32], index: 5, kind: output, shape index: {1}]  }
   0x1   :  { %12 = vsyncpa [#allocation7], 0  ;;  %s1285_s18 = smov 0  }
   0x2 LB: > { %s184_s21 = sshll.u32 %s1444_s2, 4  ;;  %s1294_s22 = sadd.s32 4294967295, %s1245_s18   ;;  %s1245_s18 = sphi %s1285_s18, %s18_s18   ;;  %s185_s21 = int_to_ptr.hbm [resolvable:$true] %s184_s21 }
   0x3   : > { %p1026_p0 = scmp.ge.s32.totalorder %s1245_s18, 1  ;;  %p173_p1 = scmp.lt.s32.totalorder %s1245_s18, 3 }
   0x4   : > { %p1027_p2 = scmp.ne.s32.totalorder %s1294_s22, 0  ;;  %p1087_p3 = scmp.eq.s32.totalorder %s1294_s22, 0 }
   0x5   : > { %p1300_p4 = pnand %p1026_p0, %p173_p1  ;;  %s1247_s24 = smov [#allocation4]  }
   0x6   : > { %s186_s25 = sshll.u32 %s1247_s24, 4  ;;  %s198_s28 = sshll.u32 %s1445_s3, 4  ;;  %s187_s25 = int_to_ptr.vmem [resolvable:$true] %s186_s25  ;;  %s199_s28 = int_to_ptr.hbm [resolvable:$true] %s198_s28 }
   0x7   : > { %p1080_p5 = pneg %p1300_p4  ;;  %s1248_s29 = smov [#allocation6]  }
   0x8   : > { %s200_s30 = sshll.u32 %s1248_s29, 4  ;;  %s1249_s6 = smov 128   ;;  %s201_s30 = int_to_ptr.vmem [resolvable:$true] %s200_s30 }
   0x9   : > { %p1081_p6 = pnand %p1087_p3, %p1080_p5  ;;  %s1250_s7 = smov 8  }
   0xa   : > { %236 = sbr.rel (%p1300_p4) target bundleno = 2373 (0x945), region = 36 }
   0xb   : > { %1083 = dma.hbm_to_vmem [thread:$0]  (!%p1081_p6), %s185_s21, 512, %s187_s25, [#allocation5], %s1249_s6, %s1249_s6, %s1250_s7  }
   0xc   : > { %1086 = dma.hbm_to_vmem [thread:$0]  (!%p1081_p6), %s199_s28, 512, %s201_s30, [#allocation7], %s1249_s6, %s1249_s6, %s1250_s7  }
   0xf   : > { %1236 = dma.done.wait (%p1087_p3), [#allocation5], 512  }
  0x10   : > { %1238 = vsyncadd (%p1087_p3), [#allocation5], 4294966784 }
  0x11   : > { %1240 = dma.done.wait (%p1087_p3), [#allocation7], 512  }
  0x12   : > { %1242 = vsyncadd (%p1087_p3), [#allocation7], 4294966784  ;;  %s1033_s8 = sshll.u32 %s1294_s22, 2  ;;  %s288_s9 = ssub.s32 1, %s1294_s22 }
  0x13   : > { %p283_p7 = scmp.lt.s32.totalorder %s1033_s8, 7  ;;  %s1035_s10 = sshll.u32 %s288_s9, 2 }
  0x14   : > { %p290_p8 = scmp.lt.s32.totalorder %s1035_s10, 7 }
  0x15   : > { %s1450_s8 = smov (!%p283_p7, %s1033_s8), 7  ;;  %313 = sbr.rel (%p1027_p2) target bundleno = 31 (0x1f), region = 48 }
  0x16   : > { %s1452_s10 = smov (!%p290_p8, %s1035_s10), 7  ;;  %s1034_s11 = sshll.u32 %s1450_s8, 1 }
  0x17   : > { %s1326_s14 = scalar_lea.vmem %s1442_s0, %s1034_s11  ;;  %s1036_s15 = sshll.u32 %s1452_s10, 1 }
  0x18   : > { %s1331_s19 = scalar_lea.vmem %s1443_s1, %s1036_s15  ;;  %s1336_s23 = scalar_lea.vmem %s1446_s4, %s1034_s11 }
  0x19   : > { %s1341_s26 = scalar_lea.vmem %s1447_s5, %s1036_s15 }
  0x1a   : > { %vm314_vm0 = vcmask 254976   ;;  %v1251_v0 = vmov 0.0  }
  0x1b   : > { %315 = vst.msk [vmem:[#allocation2] sm:$0x3] %vm314_vm0, %v1251_v0 }
  0x1c   : > { %316 = vst.msk [vmem:[#allocation2 + $0x2] sm:$0x3] %vm314_vm0, %v1251_v0 }
  0x1d   : > { %317 = vst.msk [vmem:[#allocation3] sm:$0x3] %vm314_vm0, %v1251_v0 }
  0x1e   : > { %318 = vst.msk [vmem:[#allocation3 + $0x2] sm:$0x3] %vm314_vm0, %v1251_v0 }
  0x1f PF: > { %v322_v1 = vld [vmem:[#allocation4 + $0x18] sm:$0xff]  ;;  %v321_v3 = vld [vmem:[#allocation4 + $0x10] sm:$0xff]  ;;  %v320_v5 = vld [vmem:[#allocation4 + $0x8] sm:$0xff]  ;;  %s1252_s22 = smov 32   ;;  %vm333_vm1 = vcmask 261120   ;;  %s1253_s27 = smov 64  }
  0x20   : > { %v326_v2 = vld [vmem:[#allocation6 + $0x18] sm:$0xff]  ;;  %349 = vmatpush.msra.mxu0 %v322_v1  ;;  %v325_v4 = vld [vmem:[#allocation6 + $0x10] sm:$0xff]  ;;  %v324_v6 = vld [vmem:[#allocation6 + $0x8] sm:$0xff]  ;;  %493 = vmatpush.msra.mxu2 %v322_v1  ;;  %vm471_vm10 = vcmask 254976   ;;  %s1254_s28 = smov 96  }
  0x21   : > { %372 = vmatpush.msra.mxu1 %v326_v2  ;;  %515 = vmatpush.msra.mxu3 %v326_v2  ;;  %v319_v8 = vld [vmem:[#allocation4] sm:$0xff]  ;;  %v380_v13 = vld [vmem:[%s1326_s14] sm:$0x3]  ;;  %v1045_v17 = vld [vmem:[%s1331_s19 + $0x6] sm:$0x3] }
  0x22   : > { %350 = vmatpush.msra.mxu0 %v321_v3  ;;  %v323_v9 = vld [vmem:[#allocation6] sm:$0xff]  ;;  %494 = vmatpush.msra.mxu2 %v321_v3  ;;  %v327_v10 = vld [vmem:[#allocation2] sm:$0x3] }
  0x23   : > { %373 = vmatpush.msra.mxu1 %v325_v4  ;;  %v330_v11 = vld [vmem:[#allocation2 + $0x2] sm:$0x3]  ;;  %516 = vmatpush.msra.mxu3 %v325_v4 }
  0x24   : > { %v328_v7 = vld [vmem:[#allocation3] sm:$0x3]  ;;  %351 = vmatpush.msra.mxu0 %v320_v5  ;;  %495 = vmatpush.msra.mxu2 %v320_v5 }
  0x25   : > { %403 = vrot.lane.b32.xlu1 %v328_v7, %s1252_s22  ;;  %374 = vmatpush.msra.mxu1 %v324_v6  ;;  %v332_v12 = vld [vmem:[#allocation3 + $0x2] sm:$0x3]  ;;  %v1052_v7 = vld [vmem:[%s1331_s19 + $0x4] sm:$0x3] }
  0x26   : > { %352 = vmatpush.msra.mxu0 %v319_v8  ;;  %496 = vmatpush.msra.mxu2 %v319_v8 }
  0x27   : > { %375 = vmatpush.msra.mxu1 %v323_v9  ;;  %1042 = vmatmul.msk.f32.vlgmr.msra.gmra.mxu0 %vm333_vm1, %v327_v10 }
  0x28   : > { %1043 = vmatmul.msk.f32.vlgmr.msra.gmra.mxu1 %vm333_vm1, %v330_v11  ;;  %517 = vmatpush.msra.mxu3 %v324_v6 }
  0x29   : > { %629 = vmatpush.msrb.mxu0 %v322_v1  ;;  %651 = vmatpush.msrb.mxu1 %v326_v2 }
  0x2a   : > { %518 = vmatpush.msra.mxu3 %v323_v9  ;;  %765 = vmatpush.msrb.mxu2 %v322_v1 }
  0x2b   : > { %630 = vmatpush.msrb.mxu0 %v321_v3  ;;  %652 = vmatpush.msrb.mxu1 %v325_v4 }
  0x2c   : > { %766 = vmatpush.msrb.mxu2 %v321_v3  ;;  %787 = vmatpush.msrb.mxu3 %v326_v2  ;;  %v1050_v3 = vld [vmem:[%s1326_s14 + $0x2] sm:$0x3] }
  0x2d   : > { %447 = vrot.lane.b32.xlu1 %v332_v12, %s1252_s22  ;;  %631 = vmatpush.msrb.mxu0 %v320_v5 }
  0x2e   : > { %653 = vmatpush.msrb.mxu1 %v324_v6  ;;  %767 = vmatpush.msrb.mxu2 %v320_v5 }
  0x2f   : > { %632 = vmatpush.msrb.mxu0 %v319_v8  ;;  %788 = vmatpush.msrb.mxu3 %v325_v4 }
  0x30   : > { %654 = vmatpush.msrb.mxu1 %v323_v9  ;;  %768 = vmatpush.msrb.mxu2 %v319_v8 }
  0x31   : > { %789 = vmatpush.msrb.mxu3 %v324_v6 }
  0x33   : > { %790 = vmatpush.msrb.mxu3 %v323_v9 }
  0x97   : > { %v404_v51 = vpop.permute.xlu1 %403 }
  0x9f   : > { %v448_v55 = vpop.permute.xlu1 %447 }
  0xa4   : > { %v354_v14 = vpop.f32.mrf.mxu0 }
  0xa5   : > { %v381_v15 = vadd.f32 %v380_v13, %v354_v14  ;;  %v377_v16 = vpop.f32.mrf.mxu1 }
  0xa6   : > { %v425_v18 = vadd.f32 %v1045_v17, %v377_v16 }
  0xa7   : > { %1107 = vtanh.f32 %v381_v15  ;;  %v1044_v21 = vmul.f32 -1.442695, %v381_v15 }
  0xa8   : > { %1109 = vtanh.f32 %v425_v18  ;;  %v1046_v22 = vmul.f32 -1.442695, %v425_v18 }
  0xa9   : > { %1111 = vpow2.f32 %v1044_v21 }
  0xaa   : > { %1113 = vpow2.f32 %v1046_v22 }
  0xad   : > { %v1108_v19 = vpop.eup %1107 }
  0xae   : > { %408 = vrot.lane.b32.xlu0 %v1108_v19, %s1252_s22  ;;  %v1110_v20 = vpop.eup %1109 }
  0xaf   : > { %v1112_v23 = vpop.eup %1111 }
  0xb0   : > { %v385_v24 = vadd.f32 1.0, %v1112_v23  ;;  %v1114_v25 = vpop.eup %1113 }
  0xb1   : > { %v429_v26 = vadd.f32 1.0, %v1114_v25 }
  0xb2   : > { %1115 = vrcp.f32 %v385_v24  ;;  %v397_v35 = vand.u32 2147483648, %v385_v24  ;;  %vm391_vm3 = vweird.f32 %v385_v24  ;;  %v395_v36 = vand.u32 2147483647, %v385_v24 }
  0xb3   : > { %1117 = vrcp.f32 %v429_v26  ;;  %vm435_vm6 = vweird.f32 %v429_v26  ;;  %v441_v44 = vand.u32 2147483648, %v429_v26  ;;  %v439_v45 = vand.u32 2147483647, %v429_v26 }
  0xb4   : > { %v398_v39 = vor.u32 1.1754944e-38, %v397_v35  ;;  %vm396_vm5 = vcmp.eq.f32.partialorder %v395_v36, 8.507059e+37 }
  0xb5   : > { %v442_v47 = vor.u32 1.1754944e-38, %v441_v44  ;;  %vm440_vm9 = vcmp.eq.f32.partialorder %v439_v45, 8.507059e+37 }
  0xb6   : > { %452 = vrot.lane.b32.xlu0 %v1110_v20, %s1252_s22 }
  0xb8   : > { %v1116_v27 = vpop.eup %1115 }
  0xb9   : > { %v387_v28 = vmul.f32 %v1116_v27, %v385_v24  ;;  %v1118_v30 = vpop.eup %1117  ;;  %vm392_vm2 = vweird.f32 %v1116_v27 }
  0xba   : > { %v431_v32 = vmul.f32 %v1118_v30, %v429_v26  ;;  %vm393_vm4 = vmor %vm391_vm3, %vm392_vm2  ;;  %vm436_vm7 = vweird.f32 %v1118_v30 }
  0xbb   : > { %v388_v29 = vsub.f32 1.0, %v387_v28  ;;  %vm437_vm8 = vmor %vm435_vm6, %vm436_vm7 }
  0xbc   : > { %v432_v34 = vsub.f32 1.0, %v431_v32 }
  0xbd   : > { %v389_v31 = vmul.f32 %v1116_v27, %v388_v29 }
  0xbe   : > { %v433_v38 = vmul.f32 %v1118_v30, %v432_v34 }
  0xbf   : > { %v390_v33 = vadd.f32 %v1116_v27, %v389_v31 }
  0xc0   : > { %v434_v42 = vadd.f32 %v1118_v30, %v433_v38 }
  0xc1   : > { %v394_v37 = vsel %vm393_vm4, %v1116_v27, %v390_v33 }
  0xc2   : > { %v399_v40 = vsel %vm396_vm5, %v398_v39, %v394_v37  ;;  %v438_v46 = vsel %vm437_vm8, %v1118_v30, %v434_v42 }
  0xc3   : > { %v443_v48 = vsel %vm440_vm9, %v442_v47, %v438_v46  ;;  %v406_v52 = vmul.f32 %v404_v51, %v399_v40 }
  0xc4   : > { %v450_v56 = vmul.f32 %v448_v55, %v443_v48  ;;  %v1058_v55 = vld [vmem:[%s1326_s14 + $0x4] sm:$0x3] }
 0x120   : > { %v409_v41 = vpop.permute.xlu0 %408 }
 0x121   : > { %v411_v43 = vmul.f32 %v409_v41, %v399_v40 }
 0x123   : > { %413 = vrot.lane.b32.xlu2 %v411_v43, %s1252_s22 }
 0x128   : > { %v453_v49 = vpop.permute.xlu0 %452 }
 0x129   : > { %v455_v50 = vmul.f32 %v453_v49, %v443_v48 }
 0x12b   : > { %457 = vrot.lane.b32.xlu2 %v455_v50, %s1252_s22 }
 0x17d   : > { %v414_v53 = vpop.permute.xlu2 %413 }
 0x17e   : > { %v1355_v54 = vadd.f32 %v414_v53, %v406_v52 }
 0x180   : > { %1119 = vtanh.f32 %v1355_v54 }
 0x185   : > { %v458_v57 = vpop.permute.xlu2 %457 }
 0x186   : > { %v1120_v58 = vpop.eup %1119  ;;  %v1358_v59 = vadd.f32 %v458_v57, %v450_v56 }
 0x187   : > { %419 = vrot.lane.b32.xlu0 %v1120_v58, %s1252_s22  ;;  %v1060_v58 = vld [vmem:[%s1331_s19 + $0x2] sm:$0x3] }
 0x188   : > { %1121 = vtanh.f32 %v1358_v59 }
 0x18e   : > { %v1122_v60 = vpop.eup %1121 }
 0x18f   : > { %463 = vrot.lane.b32.xlu1 %v1122_v60, %s1252_s22 }
 0x1f9   : > { %v420_v61 = vpop.permute.xlu0 %419 }
 0x1fa   : > { %v422_v62 = vmul.f32 %v420_v61, %v399_v40 }
 0x1fc   : > { %468 = vrot.lane.b32.xlu2 %v422_v62, %s1253_s27 }
 0x201   : > { %v464_v63 = vpop.permute.xlu1 %463 }
 0x202   : > { %v466_v0 = vmul.f32 %v464_v63, %v443_v48 }
 0x204   : > { %474 = vrot.lane.b32.xlu0 %v466_v0, %s1253_s27 }
 0x256   : > { %v469_v1 = vpop.permute.xlu2 %468 }
 0x257   : > { %472 = vst.msk [vmem:[%s1336_s23] sm:$0x3] %vm471_vm10, %v469_v1  ;;  %1048 = vmatmul.msk.f32.vlgmr.msra.gmra.mxu2 %vm333_vm1, %v469_v1 }
 0x276   : > { %v475_v2 = vpop.permute.xlu0 %474 }
 0x277   : > { %1047 = vst.msk [vmem:[%s1341_s26 + $0x6] sm:$0x3] %vm471_vm10, %v475_v2  ;;  %1049 = vmatmul.msk.f32.vlgmr.msra.gmra.mxu3 %vm333_vm1, %v475_v2 }
 0x2da   : > { %v498_v4 = vpop.f32.mrf.mxu2 }
 0x2db   : > { %v525_v5 = vadd.f32 %v1050_v3, %v498_v4 }
 0x2dd   : > { %1123 = vtanh.f32 %v525_v5  ;;  %v1051_v11 = vmul.f32 -1.442695, %v525_v5 }
 0x2e3   : > { %v1124_v6 = vpop.eup %1123 }
 0x2e4   : > { %548 = vrot.lane.b32.xlu1 %v1124_v6, %s1252_s22 }
 0x2fa   : > { %v520_v8 = vpop.f32.mrf.mxu3 }
 0x2fb   : > { %v565_v9 = vadd.f32 %v1052_v7, %v520_v8 }
 0x2fd   : > { %1125 = vtanh.f32 %v565_v9  ;;  %v1053_v12 = vmul.f32 -1.442695, %v565_v9 }
 0x2fe   : > { %1127 = vpow2.f32 %v1051_v11 }
 0x2ff   : > { %1129 = vpow2.f32 %v1053_v12 }
 0x303   : > { %v1126_v10 = vpop.eup %1125 }
 0x304   : > { %588 = vrot.lane.b32.xlu2 %v1126_v10, %s1252_s22  ;;  %v1128_v13 = vpop.eup %1127 }
 0x305   : > { %v529_v14 = vadd.f32 1.0, %v1128_v13  ;;  %v1130_v15 = vpop.eup %1129 }
 0x306   : > { %v569_v16 = vadd.f32 1.0, %v1130_v15 }
 0x307   : > { %1131 = vrcp.f32 %v529_v14  ;;  %v541_v25 = vand.u32 2147483648, %v529_v14  ;;  %vm535_vm12 = vweird.f32 %v529_v14  ;;  %v539_v26 = vand.u32 2147483647, %v529_v14 }
 0x308   : > { %1133 = vrcp.f32 %v569_v16  ;;  %v581_v34 = vand.u32 2147483648, %v569_v16  ;;  %vm575_vm0 = vweird.f32 %v569_v16  ;;  %v579_v35 = vand.u32 2147483647, %v569_v16 }
 0x309   : > { %v542_v29 = vor.u32 1.1754944e-38, %v541_v25  ;;  %vm540_vm14 = vcmp.eq.f32.partialorder %v539_v26, 8.507059e+37 }
 0x30a   : > { %v582_v37 = vor.u32 1.1754944e-38, %v581_v34  ;;  %vm580_vm3 = vcmp.eq.f32.partialorder %v579_v35, 8.507059e+37 }
 0x30d   : > { %v1132_v17 = vpop.eup %1131 }
 0x30e   : > { %v531_v18 = vmul.f32 %v1132_v17, %v529_v14  ;;  %v1134_v20 = vpop.eup %1133  ;;  %vm536_vm11 = vweird.f32 %v1132_v17 }
 0x30f   : > { %v571_v22 = vmul.f32 %v1134_v20, %v569_v16  ;;  %vm537_vm13 = vmor %vm535_vm12, %vm536_vm11  ;;  %vm576_vm15 = vweird.f32 %v1134_v20 }
 0x310   : > { %v532_v19 = vsub.f32 1.0, %v531_v18  ;;  %vm577_vm2 = vmor %vm575_vm0, %vm576_vm15 }
 0x311   : > { %v572_v24 = vsub.f32 1.0, %v571_v22 }
 0x312   : > { %v533_v21 = vmul.f32 %v1132_v17, %v532_v19 }
 0x313   : > { %v573_v28 = vmul.f32 %v1134_v20, %v572_v24 }
 0x314   : > { %v534_v23 = vadd.f32 %v1132_v17, %v533_v21 }
 0x315   : > { %v574_v33 = vadd.f32 %v1134_v20, %v573_v28 }
 0x316   : > { %v538_v27 = vsel %vm537_vm13, %v1132_v17, %v534_v23 }
 0x317   : > { %v543_v31 = vsel %vm540_vm14, %v542_v29, %v538_v27  ;;  %v578_v36 = vsel %vm577_vm2, %v1134_v20, %v574_v33 }
 0x318   : > { %v583_v39 = vsel %vm580_vm3, %v582_v37, %v578_v36  ;;  %v546_v41 = vmul.f32 %v543_v31, %v1355_v54 }
 0x319   : > { %v586_v44 = vmul.f32 %v583_v39, %v1358_v59 }
 0x356   : > { %v549_v30 = vpop.permute.xlu1 %548 }
 0x357   : > { %v551_v32 = vmul.f32 %v549_v30, %v543_v31 }
 0x359   : > { %553 = vrot.lane.b32.xlu0 %v551_v32, %s1252_s22 }
 0x35e   : > { %v589_v38 = vpop.permute.xlu2 %588 }
 0x35f   : > { %v591_v40 = vmul.f32 %v589_v38, %v583_v39 }
 0x361   : > { %593 = vrot.lane.b32.xlu1 %v591_v40, %s1252_s22 }
 0x3cb   : > { %v554_v42 = vpop.permute.xlu0 %553 }
 0x3cc   : > { %v1378_v43 = vadd.f32 %v554_v42, %v546_v41 }
 0x3ce   : > { %1135 = vtanh.f32 %v1378_v43 }
 0x3d3   : > { %v594_v45 = vpop.permute.xlu1 %593 }
 0x3d4   : > { %v1136_v46 = vpop.eup %1135  ;;  %v1382_v47 = vadd.f32 %v594_v45, %v586_v44 }
 0x3d5   : > { %559 = vrot.lane.b32.xlu2 %v1136_v46, %s1252_s22  ;;  %v835_v46 = vld [vmem:[%s1331_s19] sm:$0x3] }
 0x3d6   : > { %1137 = vtanh.f32 %v1382_v47 }
 0x3dc   : > { %v1138_v48 = vpop.eup %1137 }
 0x3dd   : > { %599 = vrot.lane.b32.xlu0 %v1138_v48, %s1252_s22 }
 0x42f   : > { %v560_v49 = vpop.permute.xlu2 %559 }
 0x430   : > { %v562_v50 = vmul.f32 %v560_v49, %v543_v31 }
 0x432   : > { %604 = vrot.lane.b32.xlu1 %v562_v50, %s1253_s27 }
 0x44f   : > { %v600_v51 = vpop.permute.xlu0 %599 }
 0x450   : > { %v602_v52 = vmul.f32 %v600_v51, %v583_v39 }
 0x452   : > { %610 = vrot.lane.b32.xlu2 %v602_v52, %s1253_s27 }
 0x4a4   : > { %v605_v53 = vpop.permute.xlu1 %604 }
 0x4a5   : > { %1054 = vst.msk [vmem:[%s1336_s23 + $0x2] sm:$0x3] %vm471_vm10, %v605_v53  ;;  %1056 = vmatmul.msk.f32.vlgmr.msrb.gmra.mxu0 %vm333_vm1, %v605_v53 }
 0x4ac   : > { %v611_v54 = vpop.permute.xlu2 %610 }
 0x4ad   : > { %1055 = vst.msk [vmem:[%s1341_s26 + $0x4] sm:$0x3] %vm471_vm10, %v611_v54  ;;  %1057 = vmatmul.msk.f32.vlgmr.msrb.gmra.mxu1 %vm333_vm1, %v611_v54 }
 0x522   : > { %v634_v56 = vpop.f32.mrf.mxu0 }
 0x523   : > { %v661_v57 = vadd.f32 %v1058_v55, %v634_v56 }
 0x525   : > { %1139 = vtanh.f32 %v661_v57  ;;  %v1059_v63 = vmul.f32 -1.442695, %v661_v57 }
 0x52a   : > { %v656_v59 = vpop.f32.mrf.mxu1 }
 0x52b   : > { %v1140_v60 = vpop.eup %1139  ;;  %v701_v61 = vadd.f32 %v1060_v58, %v656_v59 }
 0x52c   : > { %684 = vrot.lane.b32.xlu0 %v1140_v60, %s1252_s22 }
 0x52d   : > { %1141 = vtanh.f32 %v701_v61  ;;  %v1061_v0 = vmul.f32 -1.442695, %v701_v61 }
 0x52e   : > { %1143 = vpow2.f32 %v1059_v63 }
 0x52f   : > { %1145 = vpow2.f32 %v1061_v0 }
 0x533   : > { %v1142_v62 = vpop.eup %1141 }
 0x534   : > { %724 = vrot.lane.b32.xlu1 %v1142_v62, %s1252_s22  ;;  %v1144_v1 = vpop.eup %1143 }
 0x535   : > { %v665_v2 = vadd.f32 1.0, %v1144_v1  ;;  %v1146_v3 = vpop.eup %1145 }
 0x536   : > { %v705_v4 = vadd.f32 1.0, %v1146_v3 }
 0x537   : > { %1147 = vrcp.f32 %v665_v2  ;;  %v677_v13 = vand.u32 2147483648, %v665_v2  ;;  %vm671_vm5 = vweird.f32 %v665_v2  ;;  %v675_v14 = vand.u32 2147483647, %v665_v2 }
 0x538   : > { %1149 = vrcp.f32 %v705_v4  ;;  %v717_v22 = vand.u32 2147483648, %v705_v4  ;;  %vm711_vm9 = vweird.f32 %v705_v4  ;;  %v715_v23 = vand.u32 2147483647, %v705_v4 }
 0x539   : > { %v678_v17 = vor.u32 1.1754944e-38, %v677_v13  ;;  %vm676_vm7 = vcmp.eq.f32.partialorder %v675_v14, 8.507059e+37 }
 0x53a   : > { %v718_v25 = vor.u32 1.1754944e-38, %v717_v22  ;;  %vm716_vm12 = vcmp.eq.f32.partialorder %v715_v23, 8.507059e+37 }
 0x53d   : > { %v1148_v5 = vpop.eup %1147 }
 0x53e   : > { %v667_v6 = vmul.f32 %v1148_v5, %v665_v2  ;;  %v1150_v8 = vpop.eup %1149  ;;  %vm672_vm4 = vweird.f32 %v1148_v5 }
 0x53f   : > { %v707_v10 = vmul.f32 %v1150_v8, %v705_v4  ;;  %vm673_vm6 = vmor %vm671_vm5, %vm672_vm4  ;;  %vm712_vm8 = vweird.f32 %v1150_v8 }
 0x540   : > { %v668_v7 = vsub.f32 1.0, %v667_v6  ;;  %vm713_vm11 = vmor %vm711_vm9, %vm712_vm8 }
 0x541   : > { %v708_v12 = vsub.f32 1.0, %v707_v10 }
 0x542   : > { %v669_v9 = vmul.f32 %v1148_v5, %v668_v7 }
 0x543   : > { %v709_v16 = vmul.f32 %v1150_v8, %v708_v12 }
 0x544   : > { %v670_v11 = vadd.f32 %v1148_v5, %v669_v9 }
 0x545   : > { %v710_v21 = vadd.f32 %v1150_v8, %v709_v16 }
 0x546   : > { %v674_v15 = vsel %vm673_vm6, %v1148_v5, %v670_v11 }
 0x547   : > { %v679_v18 = vsel %vm676_vm7, %v678_v17, %v674_v15  ;;  %v714_v24 = vsel %vm713_vm11, %v1150_v8, %v710_v21 }
 0x548   : > { %v719_v27 = vsel %vm716_vm12, %v718_v25, %v714_v24  ;;  %v682_v29 = vmul.f32 %v679_v18, %v1378_v43  ;;  %v1066_v43 = vld [vmem:[%s1326_s14 + $0x6] sm:$0x3] }
 0x549   : > { %v722_v33 = vmul.f32 %v719_v27, %v1382_v47 }
 0x59e   : > { %v685_v19 = vpop.permute.xlu0 %684 }
 0x59f   : > { %v687_v20 = vmul.f32 %v685_v19, %v679_v18 }
 0x5a1   : > { %689 = vrot.lane.b32.xlu2 %v687_v20, %s1252_s22 }
 0x5a6   : > { %v725_v26 = vpop.permute.xlu1 %724 }
 0x5a7   : > { %v727_v28 = vmul.f32 %v725_v26, %v719_v27 }
 0x5a9   : > { %729 = vrot.lane.b32.xlu0 %v727_v28, %s1252_s22 }
 0x5fb   : > { %v690_v30 = vpop.permute.xlu2 %689 }
 0x5fc   : > { %v1402_v31 = vadd.f32 %v690_v30, %v682_v29 }
 0x5fe   : > { %1151 = vtanh.f32 %v1402_v31 }
 0x604   : > { %v1152_v32 = vpop.eup %1151 }
 0x605   : > { %695 = vrot.lane.b32.xlu1 %v1152_v32, %s1252_s22 }
 0x61b   : > { %v730_v34 = vpop.permute.xlu0 %729 }
 0x61c   : > { %v1407_v35 = vadd.f32 %v730_v34, %v722_v33 }
 0x61e   : > { %1153 = vtanh.f32 %v1407_v35 }
 0x624   : > { %v1154_v36 = vpop.eup %1153 }
 0x625   : > { %735 = vrot.lane.b32.xlu2 %v1154_v36, %s1252_s22 }
 0x677   : > { %v696_v37 = vpop.permute.xlu1 %695 }
 0x678   : > { %v698_v38 = vmul.f32 %v696_v37, %v679_v18 }
 0x67a   : > { %740 = vrot.lane.b32.xlu0 %v698_v38, %s1253_s27 }
 0x67f   : > { %v736_v39 = vpop.permute.xlu2 %735 }
 0x680   : > { %v738_v40 = vmul.f32 %v736_v39, %v719_v27 }
 0x682   : > { %746 = vrot.lane.b32.xlu1 %v738_v40, %s1253_s27 }
 0x6ec   : > { %v741_v41 = vpop.permute.xlu0 %740 }
 0x6ed   : > { %1062 = vst.msk [vmem:[%s1336_s23 + $0x4] sm:$0x3] %vm471_vm10, %v741_v41  ;;  %1064 = vmatmul.msk.f32.vlgmr.msrb.gmra.mxu2 %vm333_vm1, %v741_v41 }
 0x6f4   : > { %v747_v42 = vpop.permute.xlu1 %746 }
 0x6f5   : > { %1063 = vst.msk [vmem:[%s1341_s26 + $0x2] sm:$0x3] %vm471_vm10, %v747_v42  ;;  %1065 = vmatmul.msk.f32.vlgmr.msrb.gmra.mxu3 %vm333_vm1, %v747_v42 }
 0x770   : > { %v770_v44 = vpop.f32.mrf.mxu2 }
 0x771   : > { %v797_v45 = vadd.f32 %v1066_v43, %v770_v44 }
 0x773   : > { %1155 = vtanh.f32 %v797_v45  ;;  %v1067_v51 = vmul.f32 -1.442695, %v797_v45 }
 0x778   : > { %v792_v47 = vpop.f32.mrf.mxu3 }
 0x779   : > { %v1156_v48 = vpop.eup %1155  ;;  %v836_v49 = vadd.f32 %v835_v46, %v792_v47 }
 0x77a   : > { %820 = vrot.lane.b32.xlu2 %v1156_v48, %s1252_s22 }
 0x77b   : > { %1157 = vtanh.f32 %v836_v49  ;;  %v1068_v57 = vmul.f32 -1.442695, %v836_v49 }
 0x77c   : > { %1159 = vpow2.f32 %v1067_v51 }
 0x781   : > { %v1158_v50 = vpop.eup %1157 }
 0x782   : > { %859 = vrot.lane.b32.xlu0 %v1158_v50, %s1252_s22  ;;  %v1160_v52 = vpop.eup %1159 }
 0x783   : > { %v801_v53 = vadd.f32 1.0, %v1160_v52 }
 0x785   : > { %1161 = vrcp.f32 %v801_v53  ;;  %v813_v60 = vand.u32 2147483648, %v801_v53  ;;  %vm807_vm13 = vweird.f32 %v801_v53  ;;  %v811_v61 = vand.u32 2147483647, %v801_v53 }
 0x786   : > { %1163 = vpow2.f32 %v1068_v57 }
 0x787   : > { %v814_v0 = vor.u32 1.1754944e-38, %v813_v60  ;;  %vm812_vm15 = vcmp.eq.f32.partialorder %v811_v61, 8.507059e+37 }
 0x78b   : > { %v1162_v54 = vpop.eup %1161 }
 0x78c   : > { %v803_v55 = vmul.f32 %v1162_v54, %v801_v53  ;;  %vm808_vm1 = vweird.f32 %v1162_v54  ;;  %v1164_v62 = vpop.eup %1163 }
 0x78d   : > { %vm809_vm14 = vmor %vm807_vm13, %vm808_vm1  ;;  %v840_v1 = vadd.f32 1.0, %v1164_v62 }
 0x78e   : > { %v804_v56 = vsub.f32 1.0, %v803_v55 }
 0x78f   : > { %1165 = vrcp.f32 %v840_v1  ;;  %v852_v10 = vand.u32 2147483648, %v840_v1  ;;  %vm846_vm2 = vweird.f32 %v840_v1  ;;  %v850_v11 = vand.u32 2147483647, %v840_v1 }
 0x790   : > { %v805_v58 = vmul.f32 %v1162_v54, %v804_v56 }
 0x791   : > { %v853_v13 = vor.u32 1.1754944e-38, %v852_v10  ;;  %vm851_vm4 = vcmp.eq.f32.partialorder %v850_v11, 8.507059e+37 }
 0x792   : > { %v806_v59 = vadd.f32 %v1162_v54, %v805_v58 }
 0x794   : > { %v810_v63 = vsel %vm809_vm14, %v1162_v54, %v806_v59 }
 0x795   : > { %v815_v3 = vsel %vm812_vm15, %v814_v0, %v810_v63  ;;  %v1166_v5 = vpop.eup %1165 }
 0x796   : > { %v842_v6 = vmul.f32 %v1166_v5, %v840_v1  ;;  %vm847_vm0 = vweird.f32 %v1166_v5  ;;  %v818_v17 = vmul.f32 %v815_v3, %v1402_v31 }
 0x797   : > { %vm848_vm3 = vmor %vm846_vm2, %vm847_vm0 }
 0x798   : > { %v843_v7 = vsub.f32 1.0, %v842_v6 }
 0x79a   : > { %v844_v8 = vmul.f32 %v1166_v5, %v843_v7 }
 0x79c   : > { %v845_v9 = vadd.f32 %v1166_v5, %v844_v8 }
 0x79e   : > { %v849_v12 = vsel %vm848_vm3, %v1166_v5, %v845_v9 }
 0x79f   : > { %v854_v14 = vsel %vm851_vm4, %v853_v13, %v849_v12 }
 0x7a0   : > { %v857_v20 = vmul.f32 %v854_v14, %v1407_v35 }
 0x7d4   : > { %v821_v2 = vpop.permute.xlu2 %820 }
 0x7d5   : > { %v823_v4 = vmul.f32 %v821_v2, %v815_v3 }
 0x7d7   : > { %825 = vrot.lane.b32.xlu1 %v823_v4, %s1252_s22 }
 0x7f4   : > { %v860_v15 = vpop.permute.xlu0 %859 }
 0x7f5   : > { %v862_v16 = vmul.f32 %v860_v15, %v854_v14 }
 0x7f7   : > { %864 = vrot.lane.b32.xlu2 %v862_v16, %s1252_s22 }
 0x849   : > { %v826_v18 = vpop.permute.xlu1 %825 }
 0x84a   : > { %v828_v19 = vadd.f32 %v826_v18, %v818_v17 }
 0x84c   : > { %1167 = vtanh.f32 %v828_v19 }
 0x851   : > { %v865_v21 = vpop.permute.xlu2 %864 }
 0x852   : > { %v1168_v22 = vpop.eup %1167  ;;  %v867_v23 = vadd.f32 %v865_v21, %v857_v20 }
 0x853   : > { %831 = vrot.lane.b32.xlu0 %v1168_v22, %s1252_s22 }
 0x854   : > { %1169 = vtanh.f32 %v867_v23 }
 0x85a   : > { %v1170_v24 = vpop.eup %1169 }
 0x85b   : > { %870 = vrot.lane.b32.xlu1 %v1170_v24, %s1252_s22 }
 0x863   : > { %887 = vrot.lane.b32.xlu1 %v828_v19, %s1254_s28 }
 0x8c5   : > { %v832_v25 = vpop.permute.xlu0 %831 }
 0x8c6   : > { %v834_v26 = vmul.f32 %v832_v25, %v815_v3 }
 0x8c8   : > { %875 = vrot.lane.b32.xlu2 %v834_v26, %s1253_s27 }
 0x8cd   : > { %v871_v27 = vpop.permute.xlu1 %870 }
 0x8ce   : > { %v873_v28 = vmul.f32 %v871_v27, %v854_v14 }
 0x8d0   : > { %881 = vrot.lane.b32.xlu0 %v873_v28, %s1253_s27  ;;  %893 = vrot.lane.b32.xlu2 %v867_v23, %s1254_s28 }
 0x8d5   : > { %v888_v29 = vpop.permute.xlu1 %887 }
 0x8d6   : > { %890 = vst.msk [vmem:[#allocation3] sm:$0x3] %vm471_vm10, %v888_v29 }
 0x922   : > { %v876_v30 = vpop.permute.xlu2 %875 }
 0x923   : > { %1069 = vst.msk [vmem:[%s1336_s23 + $0x6] sm:$0x3] %vm471_vm10, %v876_v30 }
 0x924   : > { %885 = vst.msk [vmem:[#allocation2] sm:$0x3] %vm471_vm10, %v876_v30 }
 0x92a   : > { %v894_v31 = vpop.permute.xlu2 %893 }
 0x92b   : > { %896 = vst.msk [vmem:[#allocation3 + $0x2] sm:$0x3] %vm471_vm10, %v894_v31 }
 0x942   : > { %v882_v32 = vpop.permute.xlu0 %881 }
 0x943   : > { %884 = vst.msk [vmem:[%s1341_s26] sm:$0x3] %vm471_vm10, %v882_v32 }
 0x944   : > { %891 = vst.msk [vmem:[#allocation2 + $0x2] sm:$0x3] %vm471_vm10, %v882_v32 }
 0x945 PF: > { %s18_s18 = sadd.s32 1, %s1245_s18  }
 0x946   : > { %p15_p9 = scmp.ge.s32.totalorder %s18_s18, 4  }
 0x948   :  { %17 = sbr.rel (!%p15_p9) target bundleno = 2 (0x2), region = 108 }
 0x94d   :  { %939 = vsyncpa [#allocation5], 1 }
 0x94e   :  { %941 = vsyncpa [#allocation5 + $0x1], 1 }
 0x94f   :  { %942 = vsyncpa [#allocation7], 1 }

// kernel: bilstm_forward.7
= control target key start
LH: loop header
LB: loop body
LE: loop exit
PB: predicated region body
PF: predicated region fallthrough
CT: control target
= control target key end

     0   :  { %s790_s23 = smov 0   ;;  %s880_s0 = inlined_call_operand.vmem [shape: f32[8,2,128], index: 0, kind: input, shape index: {}]   ;;  %s881_s1 = inlined_call_operand.vmem [shape: f32[2,128], index: 1, kind: input, shape index: {}]   ;;  %s882_s2 = inlined_call_operand.vmem [shape: f32[32,128], index: 2, kind: input, shape index: {}]   ;;  %s883_s3 = inlined_call_operand.vmem [shape: f32[32,1], index: 3, kind: input, shape index: {}]   ;;  %s884_s4 = inlined_call_operand.vmem [shape: f32[32,1], index: 4, kind: input, shape index: {}]   ;;  %s885_s5 = inlined_call_operand.<no memory space> [shape: f32[1,1], index: 5, kind: input, shape index: {}]   ;;  %s886_s6 = inlined_call_operand.vmem [shape: f32[2,1], index: 6, kind: output, shape index: {}]  }
   0x1   :  { %v11_v0 = vstv %s885_s5 }
   0x2   :  { %12 = vst [vmem:[#allocation4] sm:$0x1] %v11_v0 }
   0x3 LB: > { %s796_s24 = sadd.s32 4294967295, %s744_s23   ;;  %p662_p0 = scmp.ge.s32.totalorder %s744_s23, 1  ;;  %s744_s23 = sphi %s790_s23, %s18_s23  }
   0x4   : > { %p210_p1 = scmp.lt.s32.totalorder %s744_s23, 3 }
   0x6   : > { %p211_p2 = pnand %p662_p0, %p210_p1 }
   0x7   : > { %s663_s25 = sshll.u32 (!%p211_p2), %s796_s24, 2  ;;  %p665_p4 = scmp.ne.s32.totalorder (!%p211_p2), %s796_s24, 0 }
   0x8   : > { %214 = sbr.rel (%p211_p2) target bundleno = 2966 (0xb96), region = 44  ;;  %p236_p3 = scmp.lt.s32.totalorder (!%p211_p2), %s663_s25, 7 }
   0xd   : > { %s888_s25 = smov (!%p236_p3, %s663_s25), 7  ;;  %244 = sbr.rel (%p665_p4) target bundleno = 21 (0x15), region = 48 }
   0xe   : > { %s664_s5 = sshll.u32 %s888_s25, 1 }
   0xf   : > { %s804_s28 = scalar_lea.vmem %s880_s0, %s664_s5 }
  0x12   : > { %vm245_vm0 = vcmask 254976   ;;  %v746_v1 = vmov 0.0  }
  0x13   : > { %246 = vst.msk [vmem:[#allocation2] sm:$0x3] %vm245_vm0, %v746_v1 }
  0x14   : > { %247 = vst.msk [vmem:[#allocation3] sm:$0x3] %vm245_vm0, %v746_v1 }
  0x15 PF: > { %v251_v2 = vld [vmem:[%s882_s2 + $0x18] sm:$0xff]  ;;  %v250_v3 = vld [vmem:[%s882_s2 + $0x10] sm:$0xff]  ;;  %v249_v4 = vld [vmem:[%s882_s2 + $0x8] sm:$0xff]  ;;  %vm254_vm1 = vcmask 261120   ;;  %s747_s13 = smov 32   ;;  %s748_s14 = smov 64  }
  0x16   : > { %270 = vmatpush.msra.mxu0 %v251_v2  ;;  %338 = vmatpush.msra.mxu1 %v251_v2  ;;  %v248_v5 = vld [vmem:[%s882_s2] sm:$0xff]  ;;  %s749_s15 = smov 96   ;;  %p677_p5 = scmp.ne.s32.totalorder %s796_s24, 1 }
  0x17   : > { %403 = vmatpush.msra.mxu2 %v251_v2  ;;  %468 = vmatpush.msra.mxu3 %v251_v2  ;;  %v278_v7 = vld [vmem:[%s804_s28] sm:$0x3]  ;;  %v669_v35 = vld [vmem:[%s804_s28 + $0x2] sm:$0x3]  ;;  %v672_v61 = vld [vmem:[%s804_s28 + $0x4] sm:$0x3] }
  0x18   : > { %271 = vmatpush.msra.mxu0 %v250_v3  ;;  %339 = vmatpush.msra.mxu1 %v250_v3  ;;  %s750_s18 = smov (!%p677_p5), 32   ;;  %s751_s11 = smov (!%p677_p5), 64  }
  0x19   : > { %404 = vmatpush.msra.mxu2 %v250_v3  ;;  %469 = vmatpush.msra.mxu3 %v250_v3 }
  0x1a   : > { %272 = vmatpush.msra.mxu0 %v249_v4  ;;  %v252_v6 = vld [vmem:[#allocation2] sm:$0x3]  ;;  %340 = vmatpush.msra.mxu1 %v249_v4 }
  0x1b   : > { %405 = vmatpush.msra.mxu2 %v249_v4  ;;  %470 = vmatpush.msra.mxu3 %v249_v4  ;;  %v253_v11 = vld [vmem:[#allocation3] sm:$0x3] }
  0x1c   : > { %273 = vmatpush.msra.mxu0 %v248_v5  ;;  %341 = vmatpush.msra.mxu1 %v248_v5 }
  0x1d   : > { %666 = vmatmul.msk.f32.vlgmr.msra.gmra.mxu0 %vm254_vm1, %v252_v6  ;;  %406 = vmatpush.msra.mxu2 %v248_v5 }
  0x1e   : > { %471 = vmatpush.msra.mxu3 %v248_v5 }
  0x9a   : > { %v275_v8 = vpop.f32.mrf.mxu0 }
  0x9b   : > { %v279_v9 = vadd.f32 %v278_v7, %v275_v8 }
  0x9d   : > { %697 = vtanh.f32 %v279_v9  ;;  %v667_v12 = vmul.f32 -1.442695, %v279_v9 }
  0x9f   : > { %699 = vpow2.f32 %v667_v12 }
  0xa3   : > { %v698_v10 = vpop.eup %697 }
  0xa4   : > { %306 = vrot.lane.b32.xlu0 %v698_v10, %s747_s13 }
  0xa5   : > { %v700_v13 = vpop.eup %699 }
  0xa6   : > { %v283_v14 = vadd.f32 1.0, %v700_v13 }
  0xa8   : > { %701 = vrcp.f32 %v283_v14  ;;  %v295_v20 = vand.u32 2147483648, %v283_v14  ;;  %vm289_vm3 = vweird.f32 %v283_v14  ;;  %v293_v21 = vand.u32 2147483647, %v283_v14 }
  0xaa   : > { %v296_v23 = vor.u32 1.1754944e-38, %v295_v20  ;;  %vm294_vm5 = vcmp.eq.f32.partialorder %v293_v21, 8.507059e+37 }
  0xac   : > { %301 = vrot.lane.b32.xlu0 %v253_v11, %s747_s13 }
  0xae   : > { %v702_v15 = vpop.eup %701 }
  0xaf   : > { %v285_v16 = vmul.f32 %v702_v15, %v283_v14  ;;  %vm290_vm2 = vweird.f32 %v702_v15 }
  0xb0   : > { %vm291_vm4 = vmor %vm289_vm3, %vm290_vm2  ;;  %vm520_vm3 = vcmask 254976  }
  0xb1   : > { %v286_v17 = vsub.f32 1.0, %v285_v16 }
  0xb3   : > { %v287_v18 = vmul.f32 %v702_v15, %v286_v17 }
  0xb5   : > { %v288_v19 = vadd.f32 %v702_v15, %v287_v18 }
  0xb7   : > { %v292_v22 = vsel %vm291_vm4, %v702_v15, %v288_v19 }
  0xb8   : > { %v297_v25 = vsel %vm294_vm5, %v296_v23, %v292_v22  ;;  %v675_v23 = vld [vmem:[%s804_s28 + $0x6] sm:$0x3] }
 0x116   : > { %v307_v24 = vpop.permute.xlu0 %306 }
 0x117   : > { %v309_v26 = vmul.f32 %v307_v24, %v297_v25 }
 0x119   : > { %311 = vrot.lane.b32.xlu1 %v309_v26, %s747_s13 }
 0x11e   : > { %v302_v27 = vpop.permute.xlu0 %301 }
 0x11f   : > { %v304_v28 = vmul.f32 %v302_v27, %v297_v25 }
 0x18b   : > { %v312_v29 = vpop.permute.xlu1 %311 }
 0x18c   : > { %v314_v30 = vadd.f32 %v312_v29, %v304_v28 }
 0x18e   : > { %703 = vtanh.f32 %v314_v30 }
 0x194   : > { %v704_v31 = vpop.eup %703 }
 0x195   : > { %317 = vrot.lane.b32.xlu1 %v704_v31, %s747_s13 }
 0x207   : > { %v318_v32 = vpop.permute.xlu1 %317 }
 0x208   : > { %v320_v33 = vmul.f32 %v318_v32, %v297_v25 }
 0x20a   : > { %322 = vrot.lane.b32.xlu2 %v320_v33, %s748_s14 }
 0x264   : > { %v323_v34 = vpop.permute.xlu2 %322 }
 0x265   : > { %668 = vmatmul.msk.f32.vlgmr.msra.gmra.mxu1 %vm254_vm1, %v323_v34 }
 0x2e2   : > { %v343_v36 = vpop.f32.mrf.mxu1 }
 0x2e3   : > { %v348_v37 = vadd.f32 %v669_v35, %v343_v36 }
 0x2e5   : > { %705 = vtanh.f32 %v348_v37  ;;  %v670_v39 = vmul.f32 -1.442695, %v348_v37 }
 0x2e7   : > { %707 = vpow2.f32 %v670_v39 }
 0x2eb   : > { %v706_v38 = vpop.eup %705 }
 0x2ec   : > { %371 = vrot.lane.b32.xlu2 %v706_v38, %s747_s13 }
 0x2ed   : > { %v708_v40 = vpop.eup %707 }
 0x2ee   : > { %v352_v41 = vadd.f32 1.0, %v708_v40 }
 0x2f0   : > { %709 = vrcp.f32 %v352_v41  ;;  %v364_v47 = vand.u32 2147483648, %v352_v41  ;;  %vm358_vm7 = vweird.f32 %v352_v41  ;;  %v362_v48 = vand.u32 2147483647, %v352_v41 }
 0x2f2   : > { %v365_v50 = vor.u32 1.1754944e-38, %v364_v47  ;;  %vm363_vm9 = vcmp.eq.f32.partialorder %v362_v48, 8.507059e+37 }
 0x2f6   : > { %v710_v42 = vpop.eup %709 }
 0x2f7   : > { %v354_v43 = vmul.f32 %v710_v42, %v352_v41  ;;  %vm359_vm6 = vweird.f32 %v710_v42 }
 0x2f8   : > { %vm360_vm8 = vmor %vm358_vm7, %vm359_vm6 }
 0x2f9   : > { %v355_v44 = vsub.f32 1.0, %v354_v43 }
 0x2fb   : > { %v356_v45 = vmul.f32 %v710_v42, %v355_v44 }
 0x2fd   : > { %v357_v46 = vadd.f32 %v710_v42, %v356_v45 }
 0x2ff   : > { %v361_v49 = vsel %vm360_vm8, %v710_v42, %v357_v46 }
 0x300   : > { %v366_v52 = vsel %vm363_vm9, %v365_v50, %v361_v49 }
 0x301   : > { %v369_v54 = vmul.f32 %v366_v52, %v314_v30 }
 0x346   : > { %v372_v51 = vpop.permute.xlu2 %371 }
 0x347   : > { %v374_v53 = vmul.f32 %v372_v51, %v366_v52 }
 0x349   : > { %376 = vrot.lane.b32.xlu0 %v374_v53, %s747_s13 }
 0x3bb   : > { %v377_v55 = vpop.permute.xlu0 %376 }
 0x3bc   : > { %v379_v56 = vadd.f32 %v377_v55, %v369_v54 }
 0x3be   : > { %711 = vtanh.f32 %v379_v56 }
 0x3c4   : > { %v712_v57 = vpop.eup %711 }
 0x3c5   : > { %382 = vrot.lane.b32.xlu1 %v712_v57, %s747_s13 }
 0x437   : > { %v383_v58 = vpop.permute.xlu1 %382 }
 0x438   : > { %v385_v59 = vmul.f32 %v383_v58, %v366_v52 }
 0x43a   : > { %387 = vrot.lane.b32.xlu2 %v385_v59, %s748_s14 }
 0x494   : > { %v388_v60 = vpop.permute.xlu2 %387 }
 0x495   : > { %671 = vmatmul.msk.f32.vlgmr.msra.gmra.mxu2 %vm254_vm1, %v388_v60 }
 0x518   : > { %v408_v62 = vpop.f32.mrf.mxu2 }
 0x519   : > { %v413_v63 = vadd.f32 %v672_v61, %v408_v62 }
 0x51b   : > { %713 = vtanh.f32 %v413_v63  ;;  %v673_v1 = vmul.f32 -1.442695, %v413_v63 }
 0x51d   : > { %715 = vpow2.f32 %v673_v1 }
 0x521   : > { %v714_v0 = vpop.eup %713 }
 0x522   : > { %436 = vrot.lane.b32.xlu0 %v714_v0, %s747_s13 }
 0x523   : > { %v716_v2 = vpop.eup %715 }
 0x524   : > { %v417_v3 = vadd.f32 1.0, %v716_v2 }
 0x526   : > { %717 = vrcp.f32 %v417_v3  ;;  %v429_v9 = vand.u32 2147483648, %v417_v3  ;;  %vm423_vm11 = vweird.f32 %v417_v3  ;;  %v427_v10 = vand.u32 2147483647, %v417_v3 }
 0x528   : > { %v430_v12 = vor.u32 1.1754944e-38, %v429_v9  ;;  %vm428_vm13 = vcmp.eq.f32.partialorder %v427_v10, 8.507059e+37 }
 0x52c   : > { %v718_v4 = vpop.eup %717 }
 0x52d   : > { %v419_v5 = vmul.f32 %v718_v4, %v417_v3  ;;  %vm424_vm10 = vweird.f32 %v718_v4 }
 0x52e   : > { %vm425_vm12 = vmor %vm423_vm11, %vm424_vm10 }
 0x52f   : > { %v420_v6 = vsub.f32 1.0, %v419_v5 }
 0x531   : > { %v421_v7 = vmul.f32 %v718_v4, %v420_v6 }
 0x533   : > { %v422_v8 = vadd.f32 %v718_v4, %v421_v7 }
 0x535   : > { %v426_v11 = vsel %vm425_vm12, %v718_v4, %v422_v8 }
 0x536   : > { %v431_v14 = vsel %vm428_vm13, %v430_v12, %v426_v11 }
 0x537   : > { %v434_v16 = vmul.f32 %v431_v14, %v379_v56 }
 0x594   : > { %v437_v13 = vpop.permute.xlu0 %436 }
 0x595   : > { %v439_v15 = vmul.f32 %v437_v13, %v431_v14 }
 0x597   : > { %441 = vrot.lane.b32.xlu1 %v439_v15, %s747_s13 }
 0x609   : > { %v442_v17 = vpop.permute.xlu1 %441 }
 0x60a   : > { %v444_v18 = vadd.f32 %v442_v17, %v434_v16 }
 0x60c   : > { %719 = vtanh.f32 %v444_v18 }
 0x612   : > { %v720_v19 = vpop.eup %719 }
 0x613   : > { %447 = vrot.lane.b32.xlu2 %v720_v19, %s747_s13 }
 0x66d   : > { %v448_v20 = vpop.permute.xlu2 %447 }
 0x66e   : > { %v450_v21 = vmul.f32 %v448_v20, %v431_v14 }
 0x670   : > { %452 = vrot.lane.b32.xlu0 %v450_v21, %s748_s14 }
 0x6e2   : > { %v453_v22 = vpop.permute.xlu0 %452 }
 0x6e3   : > { %674 = vmatmul.msk.f32.vlgmr.msra.gmra.mxu3 %vm254_vm1, %v453_v22 }
 0x766   : > { %v473_v24 = vpop.f32.mrf.mxu3 }
 0x767   : > { %v478_v25 = vadd.f32 %v675_v23, %v473_v24 }
 0x769   : > { %721 = vtanh.f32 %v478_v25  ;;  %v676_v27 = vmul.f32 -1.442695, %v478_v25 }
 0x76b   : > { %723 = vpow2.f32 %v676_v27 }
 0x76f   : > { %v722_v26 = vpop.eup %721 }
 0x770   : > { %501 = vrot.lane.b32.xlu1 %v722_v26, %s747_s13 }
 0x771   : > { %v724_v28 = vpop.eup %723 }
 0x772   : > { %v482_v29 = vadd.f32 1.0, %v724_v28 }
 0x774   : > { %725 = vrcp.f32 %v482_v29  ;;  %v494_v35 = vand.u32 2147483648, %v482_v29  ;;  %vm488_vm15 = vweird.f32 %v482_v29  ;;  %v492_v36 = vand.u32 2147483647, %v482_v29 }
 0x776   : > { %v495_v38 = vor.u32 1.1754944e-38, %v494_v35  ;;  %vm493_vm2 = vcmp.eq.f32.partialorder %v492_v36, 8.507059e+37 }
 0x77a   : > { %v726_v30 = vpop.eup %725 }
 0x77b   : > { %v484_v31 = vmul.f32 %v726_v30, %v482_v29  ;;  %vm489_vm14 = vweird.f32 %v726_v30 }
 0x77c   : > { %vm490_vm0 = vmor %vm488_vm15, %vm489_vm14 }
 0x77d   : > { %v485_v32 = vsub.f32 1.0, %v484_v31 }
 0x77f   : > { %v486_v33 = vmul.f32 %v726_v30, %v485_v32 }
 0x781   : > { %v487_v34 = vadd.f32 %v726_v30, %v486_v33 }
 0x783   : > { %v491_v37 = vsel %vm490_vm0, %v726_v30, %v487_v34 }
 0x784   : > { %v496_v40 = vsel %vm493_vm2, %v495_v38, %v491_v37 }
 0x785   : > { %v499_v42 = vmul.f32 %v496_v40, %v444_v18 }
 0x7e2   : > { %v502_v39 = vpop.permute.xlu1 %501 }
 0x7e3   : > { %v504_v41 = vmul.f32 %v502_v39, %v496_v40 }
 0x7e5   : > { %506 = vrot.lane.b32.xlu2 %v504_v41, %s747_s13 }
 0x83f   : > { %v507_v43 = vpop.permute.xlu2 %506 }
 0x840   : > { %v509_v44 = vadd.f32 %v507_v43, %v499_v42 }
 0x842   : > { %727 = vtanh.f32 %v509_v44  ;;  %523 = vrot.lane.b32.xlu2 %v509_v44, %s749_s15 }
 0x848   : > { %v728_v45 = vpop.eup %727 }
 0x849   : > { %512 = vrot.lane.b32.xlu0 %v728_v45, %s747_s13 }
 0x89c   : > { %v524_v46 = vpop.permute.xlu2 %523 }
 0x89d   : > { %526 = vst.msk [vmem:[#allocation3] sm:$0x3] %vm520_vm3, %v524_v46 }
 0x8bb   : > { %v513_v47 = vpop.permute.xlu0 %512 }
 0x8bc   : > { %v515_v48 = vmul.f32 %v513_v47, %v496_v40 }
 0x8be   : > { %517 = vrot.lane.b32.xlu1 %v515_v48, %s748_s14 }
 0x92d   : > { %530 = sbr.rel (%p677_p5) target bundleno = 2966 (0xb96), region = 52 }
 0x930   : > { %v518_v49 = vpop.permute.xlu1 %517 }
 0x931   : > { %521 = vst.msk [vmem:[#allocation2] sm:$0x3] %vm520_vm3, %v518_v49 }
 0x932   : > { %v531_v50 = vld [vmem:[%s881_s1] sm:$0x3]  ;;  %v576_v7 = vld [vmem:[%s884_s4 + $0x18] sm:$0xff]  ;;  %v575_v9 = vld [vmem:[%s884_s4 + $0x10] sm:$0xff]  ;;  %vm629_vm8 = vcmask 1024  }
 0x933   : > { %730 = vtanh.f32 %v531_v50  ;;  %v678_v52 = vmul.f32 -1.442695, %v531_v50  ;;  %v572_v8 = vld [vmem:[%s883_s3 + $0x18] sm:$0xff]  ;;  %594 = vmatpush.msra.mxu0 %v576_v7  ;;  %v571_v10 = vld [vmem:[%s883_s3 + $0x10] sm:$0xff]  ;;  %v574_v11 = vld [vmem:[%s884_s4 + $0x8] sm:$0xff] }
 0x934   : > { %616 = vmatpush.msra.mxu1 %v572_v8  ;;  %v570_v12 = vld [vmem:[%s883_s3 + $0x8] sm:$0xff]  ;;  %v573_v13 = vld [vmem:[%s884_s4] sm:$0xff] }
 0x935   : > { %732 = vpow2.f32 %v678_v52  ;;  %595 = vmatpush.msra.mxu0 %v575_v9  ;;  %v569_v14 = vld [vmem:[%s883_s3] sm:$0xff] }
 0x936   : > { %617 = vmatpush.msra.mxu1 %v571_v10  ;;  %v729_v19 = vld [vmem:[#allocation4] ss:$0 sm:$0xff] }
 0x937   : > { %596 = vmatpush.msra.mxu0 %v574_v11 }
 0x938   : > { %618 = vmatpush.msra.mxu1 %v570_v12 }
 0x939   : > { %v731_v51 = vpop.eup %730  ;;  %597 = vmatpush.msra.mxu0 %v573_v13 }
 0x93a   : > { %554 = vrot.lane.b32.xlu0 %v731_v51, %s750_s18  ;;  %619 = vmatpush.msra.mxu1 %v569_v14 }
 0x93b   : > { %v733_v53 = vpop.eup %732  ;;  %680 = vmatmul.msk.f32.vlgmr.msra.gmra.mxu1 %vm254_vm1, %v518_v49 }
 0x93c   : > { %v535_v54 = vadd.f32 1.0, %v733_v53 }
 0x93e   : > { %734 = vrcp.f32 %v535_v54  ;;  %vm541_vm4 = vweird.f32 %v535_v54  ;;  %v547_v59 = vand.u32 2147483648, %v535_v54  ;;  %v545_v61 = vand.u32 2147483647, %v535_v54 }
 0x940   : > { %v548_v62 = vor.u32 1.1754944e-38, %v547_v59  ;;  %vm546_vm7 = vcmp.eq.f32.partialorder %v545_v61, 8.507059e+37 }
 0x944   : > { %v735_v55 = vpop.eup %734 }
 0x945   : > { %v537_v56 = vmul.f32 %v735_v55, %v535_v54  ;;  %vm542_vm5 = vweird.f32 %v735_v55 }
 0x946   : > { %vm543_vm6 = vmor %vm541_vm4, %vm542_vm5 }
 0x947   : > { %v538_v57 = vsub.f32 1.0, %v537_v56 }
 0x949   : > { %v539_v58 = vmul.f32 %v735_v55, %v538_v57 }
 0x94b   : > { %v540_v60 = vadd.f32 %v735_v55, %v539_v58 }
 0x94d   : > { %v544_v63 = vsel %vm543_vm6, %v735_v55, %v540_v60 }
 0x94e   : > { %v549_v0 = vsel %vm546_vm7, %v548_v62, %v544_v63 }
 0x94f   : > { %v552_v3 = vmul.f32 0.0, %v549_v0 }
 0x9ac   : > { %v555_v1 = vpop.permute.xlu0 %554 }
 0x9ad   : > { %v557_v2 = vmul.f32 %v555_v1, %v549_v0 }
 0x9af   : > { %559 = vrot.lane.b32.xlu0 %v557_v2, %s750_s18 }
 0x9b8   : > { %v621_v18 = vpop.f32.mrf.mxu1 }
 0xa21   : > { %v560_v4 = vpop.permute.xlu0 %559 }
 0xa22   : > { %v562_v5 = vadd.f32 %v560_v4, %v552_v3 }
 0xa24   : > { %736 = vtanh.f32 %v562_v5 }
 0xa2a   : > { %v737_v6 = vpop.eup %736 }
 0xa2b   : > { %565 = vrot.lane.b32.xlu1 %v737_v6, %s750_s18 }
 0xa9d   : > { %v566_v15 = vpop.permute.xlu1 %565 }
 0xa9e   : > { %v568_v16 = vmul.f32 %v566_v15, %v549_v0 }
 0xaa0   : > { %578 = vrot.lane.b32.xlu1 %v568_v16, %s751_s11 }
 0xb12   : > { %v579_v17 = vpop.permute.xlu1 %578 }
 0xb13   : > { %679 = vmatmul.msk.f32.vlgmr.msra.gmra.mxu0 %vm254_vm1, %v579_v17 }
 0xb90   : > { %v599_v20 = vpop.f32.mrf.mxu0 }
 0xb91   : > { %v622_v21 = vadd.f32 %v621_v18, %v599_v20 }
 0xb93   : > { %v628_v22 = vadd.f32 %v729_v19, %v622_v21 }
 0xb95   : > { %630 = vst.msk [vmem:[%s886_s6] sm:$0x3] %vm629_vm8, %v628_v22 }
 0xb96 PF: > { %s18_s23 = sadd.s32 1, %s744_s23  }
 0xb97   : > { %p15_p6 = scmp.ge.s32.totalorder %s18_s23, 4  }
 0xb99   :  { %17 = sbr.rel (!%p15_p6) target bundleno = 3 (0x3), region = 81 }

</bundles_post_ra>
